<compile_context>
chip_gen: v7x
topology: tpu7x:2x2x1
jax: 0.10.0
libtpu: 0.0.40
codegen_flags: <defaults>
</compile_context>

<pallas_src>
import functools
import math

import jax
import jax.numpy as jnp
from jax import lax
from jax.experimental import pallas as pl
from jax.experimental.pallas import tpu as pltpu

NEG_SLOPE = 0.2
INV_SQRT2 = 1.0 / math.sqrt(2.0)


def _leaky(x):
    return jnp.where(x >= 0, x, NEG_SLOPE * x)


def _resblock_kernel(x_ref, masks_ref, w1_ref, b1_ref, w2_ref, b2_ref,
                     out_ref, slab_ref, *, W):
    # x_ref    : (imgs, Cin, H*W)      input, NCHW with spatial flattened (lanes)
    # masks_ref: (4, H*W)              f32 0/1 rows: row-1, row+1, col-1, col+1
    # w1_ref   : (Cin, 9*Cpad)         conv_1 weight, tap-major, zero pad cols
    # b1_ref   : (Cin, 1)
    # w2_ref   : (Cout, 10*Cpad)       conv_2 weight (9 taps) ++ conv_1x1 weight,
    #                                  pre-scaled by 1/sqrt(2)
    # b2_ref   : (Cout, 1)             pre-scaled by 1/sqrt(2)
    # out_ref  : (imgs, Cout, H*W)
    # slab_ref : (imgs, 10*Cpad, H*W)  im2col slab scratch (matmul RHS)
    imgs, Cin, HW = x_ref.shape
    Cpad = slab_ref.shape[1] // 10
    slab_dtype = slab_ref.dtype

    rowm_m1 = masks_ref[0:1, :]    # valid where source row h-1 exists
    rowm_p1 = masks_ref[1:2, :]    # valid where source row h+1 exists
    colm_m1 = masks_ref[2:3, :]    # valid where source col w-1 exists
    colm_p1 = masks_ref[3:4, :]    # valid where source col w+1 exists

    def fill_taps(img, z):
        # z: (Cin, HW) f32 activated values.  Zero padding == masking because
        # leaky(0) == 0 (see correctness note in the module docstring).
        shifted_rows = (
            (pltpu.roll(z, shift=W, axis=1) * rowm_m1, -1),       # z[p - W]
            (z, 0),
            (pltpu.roll(z, shift=HW - W, axis=1) * rowm_p1, 1),   # z[p + W]
        )
        for zr, dh in shifted_rows:
            for dw in (-1, 0, 1):
                t = (dh + 1) * 3 + (dw + 1)
                if dw == 0:
                    val = zr                                       # center: free
                elif dw == -1:
                    val = pltpu.roll(zr, shift=1, axis=1) * colm_m1
                else:
                    val = pltpu.roll(zr, shift=HW - 1, axis=1) * colm_p1
                slab_ref[img, t * Cpad:t * Cpad + Cin, :] = val.astype(slab_dtype)

    # The per-image chains are fully independent (separate slab buffers), so
    # the VLIW scheduler can overlap image A's matmul with image B's tap fill.
    for img in range(imgs):
        # Zero the sublane-pad rows of this image's slab.  Done every grid step
        # (cheap / zero-cost when Cin is already tile-aligned) so it stays
        # correct when the parallel batch axis is split across TensorCores.
        if Cpad > Cin:
            zpad = jnp.zeros((Cpad - Cin, HW), slab_dtype)
            for blk in range(10):
                slab_ref[img, blk * Cpad + Cin:(blk + 1) * Cpad, :] = zpad

        x_in = x_ref[img]                                  # (Cin, HW), mxu dtype
        # Shortcut rows hold raw (un-activated) x; conv_2 applies the 1x1
        # shortcut weights to them.
        slab_ref[img, 9 * Cpad:9 * Cpad + Cin, :] = x_in

        # ---- conv_1: single (Cin, 9*Cpad) @ (9*Cpad, HW) matmul ----
        fill_taps(img, _leaky(x_in.astype(jnp.float32)))
        y1 = jnp.dot(w1_ref[...], slab_ref[img, :9 * Cpad, :],
                     preferred_element_type=jnp.float32) + b1_ref[...]

        # ---- conv_2 + fused 1x1 shortcut (and 1/sqrt2): (Cout,10*Cpad)@(10*Cpad,HW) ----
        fill_taps(img, _leaky(y1))                         # shortcut rows keep x
        y2 = jnp.dot(w2_ref[...], slab_ref[img],
                     preferred_element_type=jnp.float32) + b2_ref[...]

        out_ref[img] = y2.astype(out_ref.dtype)


def resblock_forward(x_nchw, w1, b1, w2, b2, wsc, *,
                     mxu_dtype=jnp.bfloat16, out_dtype=jnp.float32,
                     images_per_step=None):
    """x_nchw: (N, Cin, H, W). Weights in PyTorch layout (OIHW / (C,)).

    mxu_dtype:  dtype of the matmul operands (weights + im2col slab).  bf16 by
                default (f32 accumulation, f32 elementwise math); pass
                jnp.float32 for a bit-accurate (but ~3x slower on the MXU) path.
    out_dtype:  output dtype; bf16 halves output HBM traffic if the consumer
                tolerates it.
    images_per_step: batch images processed (and overlapped) per grid step.
    """
    N, Cin, H, W = x_nchw.shape
    Cout = w2.shape[0]
    HW = H * W

    if images_per_step is None:
        images_per_step = 2 if N % 2 == 0 else 1
    imgs = images_per_step
    assert N % imgs == 0, "images_per_step must divide the batch size"

    # Sublane tile of the slab dtype: 8 rows for 4-byte, 16 for 2-byte dtypes.
    sublane = 8 * 4 // jnp.dtype(mxu_dtype).itemsize
    Cpad = ((Cin + sublane - 1) // sublane) * sublane

    # Free reshape only — no transpose, no spatial pad.
    x_flat = x_nchw.reshape(N, Cin, HW).astype(mxu_dtype)

    def pack3x3(w):
        # PyTorch OIHW -> (O, tap-major 9*Cpad), channel-minor, zero pad cols.
        o = w.shape[0]
        wt = jnp.transpose(w, (0, 2, 3, 1)).reshape(o, 9, Cin)
        wt = jnp.pad(wt, ((0, 0), (0, 0), (0, Cpad - Cin)))
        return wt.reshape(o, 9 * Cpad)

    w1_mat = pack3x3(w1).astype(mxu_dtype)                           # (Cin, 9*Cpad)
    wsc_mat = jnp.pad(wsc[:, :, 0, 0], ((0, 0), (0, Cpad - Cin)))    # (Cout, Cpad)
    # Fold the 1/sqrt(2) residual scale into conv_2's weights and bias.
    w2_mat = (jnp.concatenate([pack3x3(w2), wsc_mat], axis=1)
              * INV_SQRT2).astype(mxu_dtype)                         # (Cout, 10*Cpad)
    b1c = b1.reshape(Cin, 1).astype(jnp.float32)
    b2c = (b2.reshape(Cout, 1) * INV_SQRT2).astype(jnp.float32)

    # 0/1 validity rows for the halo taps, flattened HW layout:
    #   [0] source row h-1 exists, [1] source row h+1 exists,
    #   [2] source col w-1 exists, [3] source col w+1 exists.
    hh = jnp.arange(H, dtype=jnp.int32)
    ww = jnp.arange(W, dtype=jnp.int32)
    masks = jnp.stack([
        jnp.broadcast_to((hh >= 1)[:, None], (H, W)).reshape(HW),
        jnp.broadcast_to((hh <= H - 2)[:, None], (H, W)).reshape(HW),
        jnp.broadcast_to((ww >= 1)[None, :], (H, W)).reshape(HW),
        jnp.broadcast_to((ww <= W - 2)[None, :], (H, W)).reshape(HW),
    ]).astype(jnp.float32)                                           # (4, HW)

    kernel = functools.partial(_resblock_kernel, W=W)

    out_flat = pl.pallas_call(
        kernel,
        out_shape=jax.ShapeDtypeStruct((N, Cout, HW), out_dtype),
        grid=(N // imgs,),
        in_specs=[
            pl.BlockSpec((imgs, Cin, HW), lambda b: (b, 0, 0)),
            pl.BlockSpec((4, HW), lambda b: (0, 0)),
            pl.BlockSpec((Cin, 9 * Cpad), lambda b: (0, 0)),
            pl.BlockSpec((Cin, 1), lambda b: (0, 0)),
            pl.BlockSpec((Cout, 10 * Cpad), lambda b: (0, 0)),
            pl.BlockSpec((Cout, 1), lambda b: (0, 0)),
        ],
        out_specs=pl.BlockSpec((imgs, Cout, HW), lambda b: (b, 0, 0)),
        scratch_shapes=[pltpu.VMEM((imgs, 10 * Cpad, HW), mxu_dtype)],
        compiler_params=pltpu.CompilerParams(
            dimension_semantics=("parallel",)),
    )(x_flat, masks, w1_mat, b1c, w2_mat, b2c)

    return out_flat.reshape(N, Cout, H, W)        # free reshape back to NCHW


def resblock_reference(x_nchw, w1, b1, w2, b2, wsc):
    """Pure-JAX reference mirroring the PyTorch forward (default flags)."""
    def conv(x, w, b, pad):
        y = lax.conv_general_dilated(
            x, w, window_strides=(1, 1), padding=[(pad, pad), (pad, pad)],
            dimension_numbers=('NCHW', 'OIHW', 'NCHW'))
        if b is not None:
            y = y + b.reshape(1, -1, 1, 1)
        return y

    z1 = jnp.where(x_nchw >= 0, x_nchw, NEG_SLOPE * x_nchw)
    y1 = conv(z1, w1, b1, 1)
    z2 = jnp.where(y1 >= 0, y1, NEG_SLOPE * y1)
    y2 = conv(z2, w2, b2, 1)
    sc = conv(x_nchw, wsc, None, 0)
    return (y2 + sc) / math.sqrt(2.0)


if __name__ == "__main__":
    # Small shapes: batch=2, dim_in=4, dim_out=8, spatial 16x16.
    N, Cin, Cout, H, W = 2, 4, 8, 16, 16

    key = jax.random.PRNGKey(0)
    kx, k1, kb1, k2, kb2, ks = jax.random.split(key, 6)

    x = jax.random.normal(kx, (N, Cin, H, W), dtype=jnp.float32)
    # Deterministic synthetic parameters (PyTorch layouts: OIHW / (C,)).
    w1 = jax.random.normal(k1, (Cin, Cin, 3, 3), dtype=jnp.float32) * 0.1
    b1 = jax.random.normal(kb1, (Cin,), dtype=jnp.float32) * 0.1
    w2 = jax.random.normal(k2, (Cout, Cin, 3, 3), dtype=jnp.float32) * 0.1
    b2 = jax.random.normal(kb2, (Cout,), dtype=jnp.float32) * 0.1
    wsc = jax.random.normal(ks, (Cout, Cin, 1, 1), dtype=jnp.float32) * 0.1

    ref = jax.block_until_ready(resblock_reference(x, w1, b1, w2, b2, wsc))

    # Default path: bf16 MXU operands, f32 accumulation, 2 images per step.
    out = jax.block_until_ready(resblock_forward(x, w1, b1, w2, b2, wsc))
    assert out.shape == (N, Cout, H, W)
    assert jnp.allclose(out, ref, atol=8e-2, rtol=8e-2), \
        f"bf16 max abs diff = {jnp.max(jnp.abs(out - ref))}"

    # Single-image-per-step path (same math, no chain interleave).
    out1 = jax.block_until_ready(
        resblock_forward(x, w1, b1, w2, b2, wsc, images_per_step=1))
    assert jnp.allclose(out1, ref, atol=8e-2, rtol=8e-2), \
        f"bf16 (imgs=1) max abs diff = {jnp.max(jnp.abs(out1 - ref))}"

    # f32 MXU operands: should match the reference tightly.
    out_f32 = jax.block_until_ready(
        resblock_forward(x, w1, b1, w2, b2, wsc, mxu_dtype=jnp.float32))
    assert jnp.allclose(out_f32, ref, atol=1e-4, rtol=1e-4), \
        f"f32 max abs diff = {jnp.max(jnp.abs(out_f32 - ref))}"

    print("KERNEL_OK")
</pallas_src>

<mosaic_0001>
module attributes {stable_mosaic.version = 11 : i64} {
  func.func @_resblock_kernel(%arg0: i32, %arg1: memref<2x4x256xbf16, #tpu.memory_space<vmem>>, %arg2: memref<4x256xf32, #tpu.memory_space<vmem>>, %arg3: memref<4x144xbf16, #tpu.memory_space<vmem>>, %arg4: memref<4x1xf32, #tpu.memory_space<vmem>>, %arg5: memref<8x160xbf16, #tpu.memory_space<vmem>>, %arg6: memref<8x1xf32, #tpu.memory_space<vmem>>, %arg7: memref<2x8x256xf32, #tpu.memory_space<vmem>>, %arg8: memref<2x160x256xbf16, #tpu.memory_space<vmem>>) attributes {dimension_semantics = [#tpu.dimension_semantics<parallel>], iteration_bounds = array<i64: 1>, scalar_prefetch = 0 : i64, scratch_operands = 1 : i64, tpu.core_type = #tpu.core_type<tc>, window_params = [{transform_indices = @transform_0, window_bounds = array<i64: 2, 4, 256>}, {pipeline_mode = #tpu.pipeline_mode<synchronous>, transform_indices = @transform_1, window_bounds = array<i64: 4, 256>}, {pipeline_mode = #tpu.pipeline_mode<synchronous>, transform_indices = @transform_2, window_bounds = array<i64: 4, 144>}, {pipeline_mode = #tpu.pipeline_mode<synchronous>, transform_indices = @transform_3, window_bounds = array<i64: 4, 1>}, {pipeline_mode = #tpu.pipeline_mode<synchronous>, transform_indices = @transform_4, window_bounds = array<i64: 8, 160>}, {pipeline_mode = #tpu.pipeline_mode<synchronous>, transform_indices = @transform_5, window_bounds = array<i64: 8, 1>}, {transform_indices = @transform_6, window_bounds = array<i64: 2, 8, 256>}]} {
    %c0 = arith.constant 0 : index
    %c0_0 = arith.constant 0 : index
    %0 = vector.load %arg2[%c0, %c0_0] : memref<4x256xf32, #tpu.memory_space<vmem>>, vector<1x256xf32>
    %c1 = arith.constant 1 : index
    %c0_1 = arith.constant 0 : index
    %1 = vector.load %arg2[%c1, %c0_1] : memref<4x256xf32, #tpu.memory_space<vmem>>, vector<1x256xf32>
    %c2 = arith.constant 2 : index
    %c0_2 = arith.constant 0 : index
    %2 = vector.load %arg2[%c2, %c0_2] : memref<4x256xf32, #tpu.memory_space<vmem>>, vector<1x256xf32>
    %c3 = arith.constant 3 : index
    %c0_3 = arith.constant 0 : index
    %3 = vector.load %arg2[%c3, %c0_3] : memref<4x256xf32, #tpu.memory_space<vmem>>, vector<1x256xf32>
    %cst = arith.constant 0.000000e+00 : bf16
    %4 = vector.broadcast %cst : bf16 to vector<12x256xbf16>
    %c0_4 = arith.constant 0 : index
    %c4 = arith.constant 4 : index
    %c0_5 = arith.constant 0 : index
    %5 = vector.load %arg8[%c0_4, %c4, %c0_5] : memref<2x160x256xbf16, #tpu.memory_space<vmem>>, vector<1x12x256xbf16>
    %6 = vector.shape_cast %5 : vector<1x12x256xbf16> to vector<12x256xbf16>
    %7 = vector.shape_cast %4 : vector<12x256xbf16> to vector<1x12x256xbf16>
    tpu.vector_store %arg8[%c0_4, %c4, %c0_5], %7 {strides = array<i32>} : memref<2x160x256xbf16, #tpu.memory_space<vmem>>, vector<1x12x256xbf16>,
    %c0_6 = arith.constant 0 : index
    %c20 = arith.constant 20 : index
    %c0_7 = arith.constant 0 : index
    %8 = vector.load %arg8[%c0_6, %c20, %c0_7] : memref<2x160x256xbf16, #tpu.memory_space<vmem>>, vector<1x12x256xbf16>
    %9 = vector.shape_cast %8 : vector<1x12x256xbf16> to vector<12x256xbf16>
    %10 = vector.shape_cast %4 : vector<12x256xbf16> to vector<1x12x256xbf16>
    tpu.vector_store %arg8[%c0_6, %c20, %c0_7], %10 {strides = array<i32>} : memref<2x160x256xbf16, #tpu.memory_space<vmem>>, vector<1x12x256xbf16>,
    %c0_8 = arith.constant 0 : index
    %c36 = arith.constant 36 : index
    %c0_9 = arith.constant 0 : index
    %11 = vector.load %arg8[%c0_8, %c36, %c0_9] : memref<2x160x256xbf16, #tpu.memory_space<vmem>>, vector<1x12x256xbf16>
    %12 = vector.shape_cast %11 : vector<1x12x256xbf16> to vector<12x256xbf16>
    %13 = vector.shape_cast %4 : vector<12x256xbf16> to vector<1x12x256xbf16>
    tpu.vector_store %arg8[%c0_8, %c36, %c0_9], %13 {strides = array<i32>} : memref<2x160x256xbf16, #tpu.memory_space<vmem>>, vector<1x12x256xbf16>,
    %c0_10 = arith.constant 0 : index
    %c52 = arith.constant 52 : index
    %c0_11 = arith.constant 0 : index
    %14 = vector.load %arg8[%c0_10, %c52, %c0_11] : memref<2x160x256xbf16, #tpu.memory_space<vmem>>, vector<1x12x256xbf16>
    %15 = vector.shape_cast %14 : vector<1x12x256xbf16> to vector<12x256xbf16>
    %16 = vector.shape_cast %4 : vector<12x256xbf16> to vector<1x12x256xbf16>
    tpu.vector_store %arg8[%c0_10, %c52, %c0_11], %16 {strides = array<i32>} : memref<2x160x256xbf16, #tpu.memory_space<vmem>>, vector<1x12x256xbf16>,
    %c0_12 = arith.constant 0 : index
    %c68 = arith.constant 68 : index
    %c0_13 = arith.constant 0 : index
    %17 = vector.load %arg8[%c0_12, %c68, %c0_13] : memref<2x160x256xbf16, #tpu.memory_space<vmem>>, vector<1x12x256xbf16>
    %18 = vector.shape_cast %17 : vector<1x12x256xbf16> to vector<12x256xbf16>
    %19 = vector.shape_cast %4 : vector<12x256xbf16> to vector<1x12x256xbf16>
    tpu.vector_store %arg8[%c0_12, %c68, %c0_13], %19 {strides = array<i32>} : memref<2x160x256xbf16, #tpu.memory_space<vmem>>, vector<1x12x256xbf16>,
    %c0_14 = arith.constant 0 : index
    %c84 = arith.constant 84 : index
    %c0_15 = arith.constant 0 : index
    %20 = vector.load %arg8[%c0_14, %c84, %c0_15] : memref<2x160x256xbf16, #tpu.memory_space<vmem>>, vector<1x12x256xbf16>
    %21 = vector.shape_cast %20 : vector<1x12x256xbf16> to vector<12x256xbf16>
    %22 = vector.shape_cast %4 : vector<12x256xbf16> to vector<1x12x256xbf16>
    tpu.vector_store %arg8[%c0_14, %c84, %c0_15], %22 {strides = array<i32>} : memref<2x160x256xbf16, #tpu.memory_space<vmem>>, vector<1x12x256xbf16>,
    %c0_16 = arith.constant 0 : index
    %c100 = arith.constant 100 : index
    %c0_17 = arith.constant 0 : index
    %23 = vector.load %arg8[%c0_16, %c100, %c0_17] : memref<2x160x256xbf16, #tpu.memory_space<vmem>>, vector<1x12x256xbf16>
    %24 = vector.shape_cast %23 : vector<1x12x256xbf16> to vector<12x256xbf16>
    %25 = vector.shape_cast %4 : vector<12x256xbf16> to vector<1x12x256xbf16>
    tpu.vector_store %arg8[%c0_16, %c100, %c0_17], %25 {strides = array<i32>} : memref<2x160x256xbf16, #tpu.memory_space<vmem>>, vector<1x12x256xbf16>,
    %c0_18 = arith.constant 0 : index
    %c116 = arith.constant 116 : index
    %c0_19 = arith.constant 0 : index
    %26 = vector.load %arg8[%c0_18, %c116, %c0_19] : memref<2x160x256xbf16, #tpu.memory_space<vmem>>, vector<1x12x256xbf16>
    %27 = vector.shape_cast %26 : vector<1x12x256xbf16> to vector<12x256xbf16>
    %28 = vector.shape_cast %4 : vector<12x256xbf16> to vector<1x12x256xbf16>
    tpu.vector_store %arg8[%c0_18, %c116, %c0_19], %28 {strides = array<i32>} : memref<2x160x256xbf16, #tpu.memory_space<vmem>>, vector<1x12x256xbf16>,
    %c0_20 = arith.constant 0 : index
    %c132 = arith.constant 132 : index
    %c0_21 = arith.constant 0 : index
    %29 = vector.load %arg8[%c0_20, %c132, %c0_21] : memref<2x160x256xbf16, #tpu.memory_space<vmem>>, vector<1x12x256xbf16>
    %30 = vector.shape_cast %29 : vector<1x12x256xbf16> to vector<12x256xbf16>
    %31 = vector.shape_cast %4 : vector<12x256xbf16> to vector<1x12x256xbf16>
    tpu.vector_store %arg8[%c0_20, %c132, %c0_21], %31 {strides = array<i32>} : memref<2x160x256xbf16, #tpu.memory_space<vmem>>, vector<1x12x256xbf16>,
    %c0_22 = arith.constant 0 : index
    %c148 = arith.constant 148 : index
    %c0_23 = arith.constant 0 : index
    %32 = vector.load %arg8[%c0_22, %c148, %c0_23] : memref<2x160x256xbf16, #tpu.memory_space<vmem>>, vector<1x12x256xbf16>
    %33 = vector.shape_cast %32 : vector<1x12x256xbf16> to vector<12x256xbf16>
    %34 = vector.shape_cast %4 : vector<12x256xbf16> to vector<1x12x256xbf16>
    tpu.vector_store %arg8[%c0_22, %c148, %c0_23], %34 {strides = array<i32>} : memref<2x160x256xbf16, #tpu.memory_space<vmem>>, vector<1x12x256xbf16>,
    %c0_24 = arith.constant 0 : index
    %c0_25 = arith.constant 0 : index
    %c0_26 = arith.constant 0 : index
    %35 = vector.load %arg1[%c0_24, %c0_25, %c0_26] : memref<2x4x256xbf16, #tpu.memory_space<vmem>>, vector<1x4x256xbf16>
    %36 = vector.shape_cast %35 : vector<1x4x256xbf16> to vector<4x256xbf16>
    %c0_27 = arith.constant 0 : index
    %c144 = arith.constant 144 : index
    %c0_28 = arith.constant 0 : index
    %37 = vector.load %arg8[%c0_27, %c144, %c0_28] : memref<2x160x256xbf16, #tpu.memory_space<vmem>>, vector<1x4x256xbf16>
    %38 = vector.shape_cast %37 : vector<1x4x256xbf16> to vector<4x256xbf16>
    %39 = vector.shape_cast %36 : vector<4x256xbf16> to vector<1x4x256xbf16>
    tpu.vector_store %arg8[%c0_27, %c144, %c0_28], %39 {strides = array<i32>} : memref<2x160x256xbf16, #tpu.memory_space<vmem>>, vector<1x4x256xbf16>,
    %40 = arith.extf %36 : vector<4x256xbf16> to vector<4x256xf32>
    %cst_29 = arith.constant 0.000000e+00 : f32
    %41 = vector.broadcast %cst_29 : f32 to vector<4x256xf32>
    %42 = arith.cmpf oge, %40, %41 : vector<4x256xf32>
    %cst_30 = arith.constant 2.000000e-01 : f32
    %43 = vector.broadcast %cst_30 : f32 to vector<4x256xf32>
    %44 = arith.mulf %43, %40 : vector<4x256xf32>
    %45 = arith.select %42, %40, %44 : vector<4x256xi1>, vector<4x256xf32>
    %c16_i32 = arith.constant 16 : i32
    %46 = tpu.dynamic_rotate %45 by %c16_i32 dim 1 : vector<4x256xf32>, i32 -> vector<4x256xf32>
    %47 = vector.broadcast %0 : vector<1x256xf32> to vector<4x256xf32>
    %48 = arith.mulf %46, %47 : vector<4x256xf32>
    %c240_i32 = arith.constant 240 : i32
    %49 = tpu.dynamic_rotate %45 by %c240_i32 dim 1 : vector<4x256xf32>, i32 -> vector<4x256xf32>
    %50 = vector.broadcast %1 : vector<1x256xf32> to vector<4x256xf32>
    %51 = arith.mulf %49, %50 : vector<4x256xf32>
    %c1_i32 = arith.constant 1 : i32
    %52 = tpu.dynamic_rotate %48 by %c1_i32 dim 1 : vector<4x256xf32>, i32 -> vector<4x256xf32>
    %53 = vector.broadcast %2 : vector<1x256xf32> to vector<4x256xf32>
    %54 = arith.mulf %52, %53 : vector<4x256xf32>
    %55 = arith.truncf %54 : vector<4x256xf32> to vector<4x256xbf16>
    %c0_31 = arith.constant 0 : index
    %c0_32 = arith.constant 0 : index
    %c0_33 = arith.constant 0 : index
    %56 = vector.load %arg8[%c0_31, %c0_32, %c0_33] : memref<2x160x256xbf16, #tpu.memory_space<vmem>>, vector<1x4x256xbf16>
    %57 = vector.shape_cast %56 : vector<1x4x256xbf16> to vector<4x256xbf16>
    %58 = vector.shape_cast %55 : vector<4x256xbf16> to vector<1x4x256xbf16>
    tpu.vector_store %arg8[%c0_31, %c0_32, %c0_33], %58 {strides = array<i32>} : memref<2x160x256xbf16, #tpu.memory_space<vmem>>, vector<1x4x256xbf16>,
    %59 = arith.truncf %48 : vector<4x256xf32> to vector<4x256xbf16>
    %c0_34 = arith.constant 0 : index
    %c16 = arith.constant 16 : index
    %c0_35 = arith.constant 0 : index
    %60 = vector.load %arg8[%c0_34, %c16, %c0_35] : memref<2x160x256xbf16, #tpu.memory_space<vmem>>, vector<1x4x256xbf16>
    %61 = vector.shape_cast %60 : vector<1x4x256xbf16> to vector<4x256xbf16>
    %62 = vector.shape_cast %59 : vector<4x256xbf16> to vector<1x4x256xbf16>
    tpu.vector_store %arg8[%c0_34, %c16, %c0_35], %62 {strides = array<i32>} : memref<2x160x256xbf16, #tpu.memory_space<vmem>>, vector<1x4x256xbf16>,
    %c255_i32 = arith.constant 255 : i32
    %63 = tpu.dynamic_rotate %48 by %c255_i32 dim 1 : vector<4x256xf32>, i32 -> vector<4x256xf32>
    %64 = vector.broadcast %3 : vector<1x256xf32> to vector<4x256xf32>
    %65 = arith.mulf %63, %64 : vector<4x256xf32>
    %66 = arith.truncf %65 : vector<4x256xf32> to vector<4x256xbf16>
    %c0_36 = arith.constant 0 : index
    %c32 = arith.constant 32 : index
    %c0_37 = arith.constant 0 : index
    %67 = vector.load %arg8[%c0_36, %c32, %c0_37] : memref<2x160x256xbf16, #tpu.memory_space<vmem>>, vector<1x4x256xbf16>
    %68 = vector.shape_cast %67 : vector<1x4x256xbf16> to vector<4x256xbf16>
    %69 = vector.shape_cast %66 : vector<4x256xbf16> to vector<1x4x256xbf16>
    tpu.vector_store %arg8[%c0_36, %c32, %c0_37], %69 {strides = array<i32>} : memref<2x160x256xbf16, #tpu.memory_space<vmem>>, vector<1x4x256xbf16>,
    %c1_i32_38 = arith.constant 1 : i32
    %70 = tpu.dynamic_rotate %45 by %c1_i32_38 dim 1 : vector<4x256xf32>, i32 -> vector<4x256xf32>
    %71 = vector.broadcast %2 : vector<1x256xf32> to vector<4x256xf32>
    %72 = arith.mulf %70, %71 : vector<4x256xf32>
    %73 = arith.truncf %72 : vector<4x256xf32> to vector<4x256xbf16>
    %c0_39 = arith.constant 0 : index
    %c48 = arith.constant 48 : index
    %c0_40 = arith.constant 0 : index
    %74 = vector.load %arg8[%c0_39, %c48, %c0_40] : memref<2x160x256xbf16, #tpu.memory_space<vmem>>, vector<1x4x256xbf16>
    %75 = vector.shape_cast %74 : vector<1x4x256xbf16> to vector<4x256xbf16>
    %76 = vector.shape_cast %73 : vector<4x256xbf16> to vector<1x4x256xbf16>
    tpu.vector_store %arg8[%c0_39, %c48, %c0_40], %76 {strides = array<i32>} : memref<2x160x256xbf16, #tpu.memory_space<vmem>>, vector<1x4x256xbf16>,
    %77 = arith.truncf %45 : vector<4x256xf32> to vector<4x256xbf16>
    %c0_41 = arith.constant 0 : index
    %c64 = arith.constant 64 : index
    %c0_42 = arith.constant 0 : index
    %78 = vector.load %arg8[%c0_41, %c64, %c0_42] : memref<2x160x256xbf16, #tpu.memory_space<vmem>>, vector<1x4x256xbf16>
    %79 = vector.shape_cast %78 : vector<1x4x256xbf16> to vector<4x256xbf16>
    %80 = vector.shape_cast %77 : vector<4x256xbf16> to vector<1x4x256xbf16>
    tpu.vector_store %arg8[%c0_41, %c64, %c0_42], %80 {strides = array<i32>} : memref<2x160x256xbf16, #tpu.memory_space<vmem>>, vector<1x4x256xbf16>,
    %c255_i32_43 = arith.constant 255 : i32
    %81 = tpu.dynamic_rotate %45 by %c255_i32_43 dim 1 : vector<4x256xf32>, i32 -> vector<4x256xf32>
    %82 = vector.broadcast %3 : vector<1x256xf32> to vector<4x256xf32>
    %83 = arith.mulf %81, %82 : vector<4x256xf32>
    %84 = arith.truncf %83 : vector<4x256xf32> to vector<4x256xbf16>
    %c0_44 = arith.constant 0 : index
    %c80 = arith.constant 80 : index
    %c0_45 = arith.constant 0 : index
    %85 = vector.load %arg8[%c0_44, %c80, %c0_45] : memref<2x160x256xbf16, #tpu.memory_space<vmem>>, vector<1x4x256xbf16>
    %86 = vector.shape_cast %85 : vector<1x4x256xbf16> to vector<4x256xbf16>
    %87 = vector.shape_cast %84 : vector<4x256xbf16> to vector<1x4x256xbf16>
    tpu.vector_store %arg8[%c0_44, %c80, %c0_45], %87 {strides = array<i32>} : memref<2x160x256xbf16, #tpu.memory_space<vmem>>, vector<1x4x256xbf16>,
    %c1_i32_46 = arith.constant 1 : i32
    %88 = tpu.dynamic_rotate %51 by %c1_i32_46 dim 1 : vector<4x256xf32>, i32 -> vector<4x256xf32>
    %89 = vector.broadcast %2 : vector<1x256xf32> to vector<4x256xf32>
    %90 = arith.mulf %88, %89 : vector<4x256xf32>
    %91 = arith.truncf %90 : vector<4x256xf32> to vector<4x256xbf16>
    %c0_47 = arith.constant 0 : index
    %c96 = arith.constant 96 : index
    %c0_48 = arith.constant 0 : index
    %92 = vector.load %arg8[%c0_47, %c96, %c0_48] : memref<2x160x256xbf16, #tpu.memory_space<vmem>>, vector<1x4x256xbf16>
    %93 = vector.shape_cast %92 : vector<1x4x256xbf16> to vector<4x256xbf16>
    %94 = vector.shape_cast %91 : vector<4x256xbf16> to vector<1x4x256xbf16>
    tpu.vector_store %arg8[%c0_47, %c96, %c0_48], %94 {strides = array<i32>} : memref<2x160x256xbf16, #tpu.memory_space<vmem>>, vector<1x4x256xbf16>,
    %95 = arith.truncf %51 : vector<4x256xf32> to vector<4x256xbf16>
    %c0_49 = arith.constant 0 : index
    %c112 = arith.constant 112 : index
    %c0_50 = arith.constant 0 : index
    %96 = vector.load %arg8[%c0_49, %c112, %c0_50] : memref<2x160x256xbf16, #tpu.memory_space<vmem>>, vector<1x4x256xbf16>
    %97 = vector.shape_cast %96 : vector<1x4x256xbf16> to vector<4x256xbf16>
    %98 = vector.shape_cast %95 : vector<4x256xbf16> to vector<1x4x256xbf16>
    tpu.vector_store %arg8[%c0_49, %c112, %c0_50], %98 {strides = array<i32>} : memref<2x160x256xbf16, #tpu.memory_space<vmem>>, vector<1x4x256xbf16>,
    %c255_i32_51 = arith.constant 255 : i32
    %99 = tpu.dynamic_rotate %51 by %c255_i32_51 dim 1 : vector<4x256xf32>, i32 -> vector<4x256xf32>
    %100 = vector.broadcast %3 : vector<1x256xf32> to vector<4x256xf32>
    %101 = arith.mulf %99, %100 : vector<4x256xf32>
    %102 = arith.truncf %101 : vector<4x256xf32> to vector<4x256xbf16>
    %c0_52 = arith.constant 0 : index
    %c128 = arith.constant 128 : index
    %c0_53 = arith.constant 0 : index
    %103 = vector.load %arg8[%c0_52, %c128, %c0_53] : memref<2x160x256xbf16, #tpu.memory_space<vmem>>, vector<1x4x256xbf16>
    %104 = vector.shape_cast %103 : vector<1x4x256xbf16> to vector<4x256xbf16>
    %105 = vector.shape_cast %102 : vector<4x256xbf16> to vector<1x4x256xbf16>
    tpu.vector_store %arg8[%c0_52, %c128, %c0_53], %105 {strides = array<i32>} : memref<2x160x256xbf16, #tpu.memory_space<vmem>>, vector<1x4x256xbf16>,
    %c0_54 = arith.constant 0 : index
    %c0_55 = arith.constant 0 : index
    %106 = vector.load %arg3[%c0_54, %c0_55] : memref<4x144xbf16, #tpu.memory_space<vmem>>, vector<4x144xbf16>
    %c0_56 = arith.constant 0 : index
    %c0_57 = arith.constant 0 : index
    %c0_58 = arith.constant 0 : index
    %107 = vector.load %arg8[%c0_56, %c0_57, %c0_58] : memref<2x160x256xbf16, #tpu.memory_space<vmem>>, vector<1x144x256xbf16>
    %108 = vector.shape_cast %107 : vector<1x144x256xbf16> to vector<144x256xbf16>
    %cst_59 = arith.constant dense<0.000000e+00> : vector<4x256xf32>
    %109 = tpu.matmul %106, %108, %cst_59 {dimension_numbers = #tpu.dot_dimension_numbers<[1], [0], [0], [1], [0, 0, 1, 1], [], []>} : vector<4x144xbf16>, vector<144x256xbf16>, vector<4x256xf32> -> vector<4x256xf32>
    %c0_60 = arith.constant 0 : index
    %c0_61 = arith.constant 0 : index
    %110 = vector.load %arg4[%c0_60, %c0_61] : memref<4x1xf32, #tpu.memory_space<vmem>>, vector<4x1xf32>
    %111 = vector.broadcast %110 : vector<4x1xf32> to vector<4x256xf32>
    %112 = arith.addf %109, %111 : vector<4x256xf32>
    %cst_62 = arith.constant 0.000000e+00 : f32
    %113 = vector.broadcast %cst_62 : f32 to vector<4x256xf32>
    %114 = arith.cmpf oge, %112, %113 : vector<4x256xf32>
    %cst_63 = arith.constant 2.000000e-01 : f32
    %115 = vector.broadcast %cst_63 : f32 to vector<4x256xf32>
    %116 = arith.mulf %115, %112 : vector<4x256xf32>
    %117 = arith.select %114, %112, %116 : vector<4x256xi1>, vector<4x256xf32>
    %c16_i32_64 = arith.constant 16 : i32
    %118 = tpu.dynamic_rotate %117 by %c16_i32_64 dim 1 : vector<4x256xf32>, i32 -> vector<4x256xf32>
    %119 = vector.broadcast %0 : vector<1x256xf32> to vector<4x256xf32>
    %120 = arith.mulf %118, %119 : vector<4x256xf32>
    %c240_i32_65 = arith.constant 240 : i32
    %121 = tpu.dynamic_rotate %117 by %c240_i32_65 dim 1 : vector<4x256xf32>, i32 -> vector<4x256xf32>
    %122 = vector.broadcast %1 : vector<1x256xf32> to vector<4x256xf32>
    %123 = arith.mulf %121, %122 : vector<4x256xf32>
    %c1_i32_66 = arith.constant 1 : i32
    %124 = tpu.dynamic_rotate %120 by %c1_i32_66 dim 1 : vector<4x256xf32>, i32 -> vector<4x256xf32>
    %125 = vector.broadcast %2 : vector<1x256xf32> to vector<4x256xf32>
    %126 = arith.mulf %124, %125 : vector<4x256xf32>
    %127 = arith.truncf %126 : vector<4x256xf32> to vector<4x256xbf16>
    %c0_67 = arith.constant 0 : index
    %c0_68 = arith.constant 0 : index
    %c0_69 = arith.constant 0 : index
    %128 = vector.load %arg8[%c0_67, %c0_68, %c0_69] : memref<2x160x256xbf16, #tpu.memory_space<vmem>>, vector<1x4x256xbf16>
    %129 = vector.shape_cast %128 : vector<1x4x256xbf16> to vector<4x256xbf16>
    %130 = vector.shape_cast %127 : vector<4x256xbf16> to vector<1x4x256xbf16>
    tpu.vector_store %arg8[%c0_67, %c0_68, %c0_69], %130 {strides = array<i32>} : memref<2x160x256xbf16, #tpu.memory_space<vmem>>, vector<1x4x256xbf16>,
    %131 = arith.truncf %120 : vector<4x256xf32> to vector<4x256xbf16>
    %c0_70 = arith.constant 0 : index
    %c16_71 = arith.constant 16 : index
    %c0_72 = arith.constant 0 : index
    %132 = vector.load %arg8[%c0_70, %c16_71, %c0_72] : memref<2x160x256xbf16, #tpu.memory_space<vmem>>, vector<1x4x256xbf16>
    %133 = vector.shape_cast %132 : vector<1x4x256xbf16> to vector<4x256xbf16>
    %134 = vector.shape_cast %131 : vector<4x256xbf16> to vector<1x4x256xbf16>
    tpu.vector_store %arg8[%c0_70, %c16_71, %c0_72], %134 {strides = array<i32>} : memref<2x160x256xbf16, #tpu.memory_space<vmem>>, vector<1x4x256xbf16>,
    %c255_i32_73 = arith.constant 255 : i32
    %135 = tpu.dynamic_rotate %120 by %c255_i32_73 dim 1 : vector<4x256xf32>, i32 -> vector<4x256xf32>
    %136 = vector.broadcast %3 : vector<1x256xf32> to vector<4x256xf32>
    %137 = arith.mulf %135, %136 : vector<4x256xf32>
    %138 = arith.truncf %137 : vector<4x256xf32> to vector<4x256xbf16>
    %c0_74 = arith.constant 0 : index
    %c32_75 = arith.constant 32 : index
    %c0_76 = arith.constant 0 : index
    %139 = vector.load %arg8[%c0_74, %c32_75, %c0_76] : memref<2x160x256xbf16, #tpu.memory_space<vmem>>, vector<1x4x256xbf16>
    %140 = vector.shape_cast %139 : vector<1x4x256xbf16> to vector<4x256xbf16>
    %141 = vector.shape_cast %138 : vector<4x256xbf16> to vector<1x4x256xbf16>
    tpu.vector_store %arg8[%c0_74, %c32_75, %c0_76], %141 {strides = array<i32>} : memref<2x160x256xbf16, #tpu.memory_space<vmem>>, vector<1x4x256xbf16>,
    %c1_i32_77 = arith.constant 1 : i32
    %142 = tpu.dynamic_rotate %117 by %c1_i32_77 dim 1 : vector<4x256xf32>, i32 -> vector<4x256xf32>
    %143 = vector.broadcast %2 : vector<1x256xf32> to vector<4x256xf32>
    %144 = arith.mulf %142, %143 : vector<4x256xf32>
    %145 = arith.truncf %144 : vector<4x256xf32> to vector<4x256xbf16>
    %c0_78 = arith.constant 0 : index
    %c48_79 = arith.constant 48 : index
    %c0_80 = arith.constant 0 : index
    %146 = vector.load %arg8[%c0_78, %c48_79, %c0_80] : memref<2x160x256xbf16, #tpu.memory_space<vmem>>, vector<1x4x256xbf16>
    %147 = vector.shape_cast %146 : vector<1x4x256xbf16> to vector<4x256xbf16>
    %148 = vector.shape_cast %145 : vector<4x256xbf16> to vector<1x4x256xbf16>
    tpu.vector_store %arg8[%c0_78, %c48_79, %c0_80], %148 {strides = array<i32>} : memref<2x160x256xbf16, #tpu.memory_space<vmem>>, vector<1x4x256xbf16>,
    %149 = arith.truncf %117 : vector<4x256xf32> to vector<4x256xbf16>
    %c0_81 = arith.constant 0 : index
    %c64_82 = arith.constant 64 : index
    %c0_83 = arith.constant 0 : index
    %150 = vector.load %arg8[%c0_81, %c64_82, %c0_83] : memref<2x160x256xbf16, #tpu.memory_space<vmem>>, vector<1x4x256xbf16>
    %151 = vector.shape_cast %150 : vector<1x4x256xbf16> to vector<4x256xbf16>
    %152 = vector.shape_cast %149 : vector<4x256xbf16> to vector<1x4x256xbf16>
    tpu.vector_store %arg8[%c0_81, %c64_82, %c0_83], %152 {strides = array<i32>} : memref<2x160x256xbf16, #tpu.memory_space<vmem>>, vector<1x4x256xbf16>,
    %c255_i32_84 = arith.constant 255 : i32
    %153 = tpu.dynamic_rotate %117 by %c255_i32_84 dim 1 : vector<4x256xf32>, i32 -> vector<4x256xf32>
    %154 = vector.broadcast %3 : vector<1x256xf32> to vector<4x256xf32>
    %155 = arith.mulf %153, %154 : vector<4x256xf32>
    %156 = arith.truncf %155 : vector<4x256xf32> to vector<4x256xbf16>
    %c0_85 = arith.constant 0 : index
    %c80_86 = arith.constant 80 : index
    %c0_87 = arith.constant 0 : index
    %157 = vector.load %arg8[%c0_85, %c80_86, %c0_87] : memref<2x160x256xbf16, #tpu.memory_space<vmem>>, vector<1x4x256xbf16>
    %158 = vector.shape_cast %157 : vector<1x4x256xbf16> to vector<4x256xbf16>
    %159 = vector.shape_cast %156 : vector<4x256xbf16> to vector<1x4x256xbf16>
    tpu.vector_store %arg8[%c0_85, %c80_86, %c0_87], %159 {strides = array<i32>} : memref<2x160x256xbf16, #tpu.memory_space<vmem>>, vector<1x4x256xbf16>,
    %c1_i32_88 = arith.constant 1 : i32
    %160 = tpu.dynamic_rotate %123 by %c1_i32_88 dim 1 : vector<4x256xf32>, i32 -> vector<4x256xf32>
    %161 = vector.broadcast %2 : vector<1x256xf32> to vector<4x256xf32>
    %162 = arith.mulf %160, %161 : vector<4x256xf32>
    %163 = arith.truncf %162 : vector<4x256xf32> to vector<4x256xbf16>
    %c0_89 = arith.constant 0 : index
    %c96_90 = arith.constant 96 : index
    %c0_91 = arith.constant 0 : index
    %164 = vector.load %arg8[%c0_89, %c96_90, %c0_91] : memref<2x160x256xbf16, #tpu.memory_space<vmem>>, vector<1x4x256xbf16>
    %165 = vector.shape_cast %164 : vector<1x4x256xbf16> to vector<4x256xbf16>
    %166 = vector.shape_cast %163 : vector<4x256xbf16> to vector<1x4x256xbf16>
    tpu.vector_store %arg8[%c0_89, %c96_90, %c0_91], %166 {strides = array<i32>} : memref<2x160x256xbf16, #tpu.memory_space<vmem>>, vector<1x4x256xbf16>,
    %167 = arith.truncf %123 : vector<4x256xf32> to vector<4x256xbf16>
    %c0_92 = arith.constant 0 : index
    %c112_93 = arith.constant 112 : index
    %c0_94 = arith.constant 0 : index
    %168 = vector.load %arg8[%c0_92, %c112_93, %c0_94] : memref<2x160x256xbf16, #tpu.memory_space<vmem>>, vector<1x4x256xbf16>
    %169 = vector.shape_cast %168 : vector<1x4x256xbf16> to vector<4x256xbf16>
    %170 = vector.shape_cast %167 : vector<4x256xbf16> to vector<1x4x256xbf16>
    tpu.vector_store %arg8[%c0_92, %c112_93, %c0_94], %170 {strides = array<i32>} : memref<2x160x256xbf16, #tpu.memory_space<vmem>>, vector<1x4x256xbf16>,
    %c255_i32_95 = arith.constant 255 : i32
    %171 = tpu.dynamic_rotate %123 by %c255_i32_95 dim 1 : vector<4x256xf32>, i32 -> vector<4x256xf32>
    %172 = vector.broadcast %3 : vector<1x256xf32> to vector<4x256xf32>
    %173 = arith.mulf %171, %172 : vector<4x256xf32>
    %174 = arith.truncf %173 : vector<4x256xf32> to vector<4x256xbf16>
    %c0_96 = arith.constant 0 : index
    %c128_97 = arith.constant 128 : index
    %c0_98 = arith.constant 0 : index
    %175 = vector.load %arg8[%c0_96, %c128_97, %c0_98] : memref<2x160x256xbf16, #tpu.memory_space<vmem>>, vector<1x4x256xbf16>
    %176 = vector.shape_cast %175 : vector<1x4x256xbf16> to vector<4x256xbf16>
    %177 = vector.shape_cast %174 : vector<4x256xbf16> to vector<1x4x256xbf16>
    tpu.vector_store %arg8[%c0_96, %c128_97, %c0_98], %177 {strides = array<i32>} : memref<2x160x256xbf16, #tpu.memory_space<vmem>>, vector<1x4x256xbf16>,
    %c0_99 = arith.constant 0 : index
    %c0_100 = arith.constant 0 : index
    %178 = vector.load %arg5[%c0_99, %c0_100] : memref<8x160xbf16, #tpu.memory_space<vmem>>, vector<8x160xbf16>
    %c0_101 = arith.constant 0 : index
    %c0_102 = arith.constant 0 : index
    %c0_103 = arith.constant 0 : index
    %179 = vector.load %arg8[%c0_101, %c0_102, %c0_103] : memref<2x160x256xbf16, #tpu.memory_space<vmem>>, vector<1x160x256xbf16>
    %180 = vector.shape_cast %179 : vector<1x160x256xbf16> to vector<160x256xbf16>
    %cst_104 = arith.constant dense<0.000000e+00> : vector<8x256xf32>
    %181 = tpu.matmul %178, %180, %cst_104 {dimension_numbers = #tpu.dot_dimension_numbers<[1], [0], [0], [1], [0, 0, 1, 1], [], []>} : vector<8x160xbf16>, vector<160x256xbf16>, vector<8x256xf32> -> vector<8x256xf32>
    %c0_105 = arith.constant 0 : index
    %c0_106 = arith.constant 0 : index
    %182 = vector.load %arg6[%c0_105, %c0_106] : memref<8x1xf32, #tpu.memory_space<vmem>>, vector<8x1xf32>
    %183 = vector.broadcast %182 : vector<8x1xf32> to vector<8x256xf32>
    %184 = arith.addf %181, %183 : vector<8x256xf32>
    %c0_107 = arith.constant 0 : index
    %c0_108 = arith.constant 0 : index
    %c0_109 = arith.constant 0 : index
    %185 = vector.load %arg7[%c0_107, %c0_108, %c0_109] : memref<2x8x256xf32, #tpu.memory_space<vmem>>, vector<1x8x256xf32>
    %186 = vector.shape_cast %185 : vector<1x8x256xf32> to vector<8x256xf32>
    %187 = vector.shape_cast %184 : vector<8x256xf32> to vector<1x8x256xf32>
    tpu.vector_store %arg7[%c0_107, %c0_108, %c0_109], %187 {strides = array<i32>} : memref<2x8x256xf32, #tpu.memory_space<vmem>>, vector<1x8x256xf32>,
    %cst_110 = arith.constant 0.000000e+00 : bf16
    %188 = vector.broadcast %cst_110 : bf16 to vector<12x256xbf16>
    %c1_111 = arith.constant 1 : index
    %c4_112 = arith.constant 4 : index
    %c0_113 = arith.constant 0 : index
    %189 = vector.load %arg8[%c1_111, %c4_112, %c0_113] : memref<2x160x256xbf16, #tpu.memory_space<vmem>>, vector<1x12x256xbf16>
    %190 = vector.shape_cast %189 : vector<1x12x256xbf16> to vector<12x256xbf16>
    %191 = vector.shape_cast %188 : vector<12x256xbf16> to vector<1x12x256xbf16>
    tpu.vector_store %arg8[%c1_111, %c4_112, %c0_113], %191 {strides = array<i32>} : memref<2x160x256xbf16, #tpu.memory_space<vmem>>, vector<1x12x256xbf16>,
    %c1_114 = arith.constant 1 : index
    %c20_115 = arith.constant 20 : index
    %c0_116 = arith.constant 0 : index
    %192 = vector.load %arg8[%c1_114, %c20_115, %c0_116] : memref<2x160x256xbf16, #tpu.memory_space<vmem>>, vector<1x12x256xbf16>
    %193 = vector.shape_cast %192 : vector<1x12x256xbf16> to vector<12x256xbf16>
    %194 = vector.shape_cast %188 : vector<12x256xbf16> to vector<1x12x256xbf16>
    tpu.vector_store %arg8[%c1_114, %c20_115, %c0_116], %194 {strides = array<i32>} : memref<2x160x256xbf16, #tpu.memory_space<vmem>>, vector<1x12x256xbf16>,
    %c1_117 = arith.constant 1 : index
    %c36_118 = arith.constant 36 : index
    %c0_119 = arith.constant 0 : index
    %195 = vector.load %arg8[%c1_117, %c36_118, %c0_119] : memref<2x160x256xbf16, #tpu.memory_space<vmem>>, vector<1x12x256xbf16>
    %196 = vector.shape_cast %195 : vector<1x12x256xbf16> to vector<12x256xbf16>
    %197 = vector.shape_cast %188 : vector<12x256xbf16> to vector<1x12x256xbf16>
    tpu.vector_store %arg8[%c1_117, %c36_118, %c0_119], %197 {strides = array<i32>} : memref<2x160x256xbf16, #tpu.memory_space<vmem>>, vector<1x12x256xbf16>,
    %c1_120 = arith.constant 1 : index
    %c52_121 = arith.constant 52 : index
    %c0_122 = arith.constant 0 : index
    %198 = vector.load %arg8[%c1_120, %c52_121, %c0_122] : memref<2x160x256xbf16, #tpu.memory_space<vmem>>, vector<1x12x256xbf16>
    %199 = vector.shape_cast %198 : vector<1x12x256xbf16> to vector<12x256xbf16>
    %200 = vector.shape_cast %188 : vector<12x256xbf16> to vector<1x12x256xbf16>
    tpu.vector_store %arg8[%c1_120, %c52_121, %c0_122], %200 {strides = array<i32>} : memref<2x160x256xbf16, #tpu.memory_space<vmem>>, vector<1x12x256xbf16>,
    %c1_123 = arith.constant 1 : index
    %c68_124 = arith.constant 68 : index
    %c0_125 = arith.constant 0 : index
    %201 = vector.load %arg8[%c1_123, %c68_124, %c0_125] : memref<2x160x256xbf16, #tpu.memory_space<vmem>>, vector<1x12x256xbf16>
    %202 = vector.shape_cast %201 : vector<1x12x256xbf16> to vector<12x256xbf16>
    %203 = vector.shape_cast %188 : vector<12x256xbf16> to vector<1x12x256xbf16>
    tpu.vector_store %arg8[%c1_123, %c68_124, %c0_125], %203 {strides = array<i32>} : memref<2x160x256xbf16, #tpu.memory_space<vmem>>, vector<1x12x256xbf16>,
    %c1_126 = arith.constant 1 : index
    %c84_127 = arith.constant 84 : index
    %c0_128 = arith.constant 0 : index
    %204 = vector.load %arg8[%c1_126, %c84_127, %c0_128] : memref<2x160x256xbf16, #tpu.memory_space<vmem>>, vector<1x12x256xbf16>
    %205 = vector.shape_cast %204 : vector<1x12x256xbf16> to vector<12x256xbf16>
    %206 = vector.shape_cast %188 : vector<12x256xbf16> to vector<1x12x256xbf16>
    tpu.vector_store %arg8[%c1_126, %c84_127, %c0_128], %206 {strides = array<i32>} : memref<2x160x256xbf16, #tpu.memory_space<vmem>>, vector<1x12x256xbf16>,
    %c1_129 = arith.constant 1 : index
    %c100_130 = arith.constant 100 : index
    %c0_131 = arith.constant 0 : index
    %207 = vector.load %arg8[%c1_129, %c100_130, %c0_131] : memref<2x160x256xbf16, #tpu.memory_space<vmem>>, vector<1x12x256xbf16>
    %208 = vector.shape_cast %207 : vector<1x12x256xbf16> to vector<12x256xbf16>
    %209 = vector.shape_cast %188 : vector<12x256xbf16> to vector<1x12x256xbf16>
    tpu.vector_store %arg8[%c1_129, %c100_130, %c0_131], %209 {strides = array<i32>} : memref<2x160x256xbf16, #tpu.memory_space<vmem>>, vector<1x12x256xbf16>,
    %c1_132 = arith.constant 1 : index
    %c116_133 = arith.constant 116 : index
    %c0_134 = arith.constant 0 : index
    %210 = vector.load %arg8[%c1_132, %c116_133, %c0_134] : memref<2x160x256xbf16, #tpu.memory_space<vmem>>, vector<1x12x256xbf16>
    %211 = vector.shape_cast %210 : vector<1x12x256xbf16> to vector<12x256xbf16>
    %212 = vector.shape_cast %188 : vector<12x256xbf16> to vector<1x12x256xbf16>
    tpu.vector_store %arg8[%c1_132, %c116_133, %c0_134], %212 {strides = array<i32>} : memref<2x160x256xbf16, #tpu.memory_space<vmem>>, vector<1x12x256xbf16>,
    %c1_135 = arith.constant 1 : index
    %c132_136 = arith.constant 132 : index
    %c0_137 = arith.constant 0 : index
    %213 = vector.load %arg8[%c1_135, %c132_136, %c0_137] : memref<2x160x256xbf16, #tpu.memory_space<vmem>>, vector<1x12x256xbf16>
    %214 = vector.shape_cast %213 : vector<1x12x256xbf16> to vector<12x256xbf16>
    %215 = vector.shape_cast %188 : vector<12x256xbf16> to vector<1x12x256xbf16>
    tpu.vector_store %arg8[%c1_135, %c132_136, %c0_137], %215 {strides = array<i32>} : memref<2x160x256xbf16, #tpu.memory_space<vmem>>, vector<1x12x256xbf16>,
    %c1_138 = arith.constant 1 : index
    %c148_139 = arith.constant 148 : index
    %c0_140 = arith.constant 0 : index
    %216 = vector.load %arg8[%c1_138, %c148_139, %c0_140] : memref<2x160x256xbf16, #tpu.memory_space<vmem>>, vector<1x12x256xbf16>
    %217 = vector.shape_cast %216 : vector<1x12x256xbf16> to vector<12x256xbf16>
    %218 = vector.shape_cast %188 : vector<12x256xbf16> to vector<1x12x256xbf16>
    tpu.vector_store %arg8[%c1_138, %c148_139, %c0_140], %218 {strides = array<i32>} : memref<2x160x256xbf16, #tpu.memory_space<vmem>>, vector<1x12x256xbf16>,
    %c1_141 = arith.constant 1 : index
    %c0_142 = arith.constant 0 : index
    %c0_143 = arith.constant 0 : index
    %219 = vector.load %arg1[%c1_141, %c0_142, %c0_143] : memref<2x4x256xbf16, #tpu.memory_space<vmem>>, vector<1x4x256xbf16>
    %220 = vector.shape_cast %219 : vector<1x4x256xbf16> to vector<4x256xbf16>
    %c1_144 = arith.constant 1 : index
    %c144_145 = arith.constant 144 : index
    %c0_146 = arith.constant 0 : index
    %221 = vector.load %arg8[%c1_144, %c144_145, %c0_146] : memref<2x160x256xbf16, #tpu.memory_space<vmem>>, vector<1x4x256xbf16>
    %222 = vector.shape_cast %221 : vector<1x4x256xbf16> to vector<4x256xbf16>
    %223 = vector.shape_cast %220 : vector<4x256xbf16> to vector<1x4x256xbf16>
    tpu.vector_store %arg8[%c1_144, %c144_145, %c0_146], %223 {strides = array<i32>} : memref<2x160x256xbf16, #tpu.memory_space<vmem>>, vector<1x4x256xbf16>,
    %224 = arith.extf %220 : vector<4x256xbf16> to vector<4x256xf32>
    %cst_147 = arith.constant 0.000000e+00 : f32
    %225 = vector.broadcast %cst_147 : f32 to vector<4x256xf32>
    %226 = arith.cmpf oge, %224, %225 : vector<4x256xf32>
    %cst_148 = arith.constant 2.000000e-01 : f32
    %227 = vector.broadcast %cst_148 : f32 to vector<4x256xf32>
    %228 = arith.mulf %227, %224 : vector<4x256xf32>
    %229 = arith.select %226, %224, %228 : vector<4x256xi1>, vector<4x256xf32>
    %c16_i32_149 = arith.constant 16 : i32
    %230 = tpu.dynamic_rotate %229 by %c16_i32_149 dim 1 : vector<4x256xf32>, i32 -> vector<4x256xf32>
    %231 = vector.broadcast %0 : vector<1x256xf32> to vector<4x256xf32>
    %232 = arith.mulf %230, %231 : vector<4x256xf32>
    %c240_i32_150 = arith.constant 240 : i32
    %233 = tpu.dynamic_rotate %229 by %c240_i32_150 dim 1 : vector<4x256xf32>, i32 -> vector<4x256xf32>
    %234 = vector.broadcast %1 : vector<1x256xf32> to vector<4x256xf32>
    %235 = arith.mulf %233, %234 : vector<4x256xf32>
    %c1_i32_151 = arith.constant 1 : i32
    %236 = tpu.dynamic_rotate %232 by %c1_i32_151 dim 1 : vector<4x256xf32>, i32 -> vector<4x256xf32>
    %237 = vector.broadcast %2 : vector<1x256xf32> to vector<4x256xf32>
    %238 = arith.mulf %236, %237 : vector<4x256xf32>
    %239 = arith.truncf %238 : vector<4x256xf32> to vector<4x256xbf16>
    %c1_152 = arith.constant 1 : index
    %c0_153 = arith.constant 0 : index
    %c0_154 = arith.constant 0 : index
    %240 = vector.load %arg8[%c1_152, %c0_153, %c0_154] : memref<2x160x256xbf16, #tpu.memory_space<vmem>>, vector<1x4x256xbf16>
    %241 = vector.shape_cast %240 : vector<1x4x256xbf16> to vector<4x256xbf16>
    %242 = vector.shape_cast %239 : vector<4x256xbf16> to vector<1x4x256xbf16>
    tpu.vector_store %arg8[%c1_152, %c0_153, %c0_154], %242 {strides = array<i32>} : memref<2x160x256xbf16, #tpu.memory_space<vmem>>, vector<1x4x256xbf16>,
    %243 = arith.truncf %232 : vector<4x256xf32> to vector<4x256xbf16>
    %c1_155 = arith.constant 1 : index
    %c16_156 = arith.constant 16 : index
    %c0_157 = arith.constant 0 : index
    %244 = vector.load %arg8[%c1_155, %c16_156, %c0_157] : memref<2x160x256xbf16, #tpu.memory_space<vmem>>, vector<1x4x256xbf16>
    %245 = vector.shape_cast %244 : vector<1x4x256xbf16> to vector<4x256xbf16>
    %246 = vector.shape_cast %243 : vector<4x256xbf16> to vector<1x4x256xbf16>
    tpu.vector_store %arg8[%c1_155, %c16_156, %c0_157], %246 {strides = array<i32>} : memref<2x160x256xbf16, #tpu.memory_space<vmem>>, vector<1x4x256xbf16>,
    %c255_i32_158 = arith.constant 255 : i32
    %247 = tpu.dynamic_rotate %232 by %c255_i32_158 dim 1 : vector<4x256xf32>, i32 -> vector<4x256xf32>
    %248 = vector.broadcast %3 : vector<1x256xf32> to vector<4x256xf32>
    %249 = arith.mulf %247, %248 : vector<4x256xf32>
    %250 = arith.truncf %249 : vector<4x256xf32> to vector<4x256xbf16>
    %c1_159 = arith.constant 1 : index
    %c32_160 = arith.constant 32 : index
    %c0_161 = arith.constant 0 : index
    %251 = vector.load %arg8[%c1_159, %c32_160, %c0_161] : memref<2x160x256xbf16, #tpu.memory_space<vmem>>, vector<1x4x256xbf16>
    %252 = vector.shape_cast %251 : vector<1x4x256xbf16> to vector<4x256xbf16>
    %253 = vector.shape_cast %250 : vector<4x256xbf16> to vector<1x4x256xbf16>
    tpu.vector_store %arg8[%c1_159, %c32_160, %c0_161], %253 {strides = array<i32>} : memref<2x160x256xbf16, #tpu.memory_space<vmem>>, vector<1x4x256xbf16>,
    %c1_i32_162 = arith.constant 1 : i32
    %254 = tpu.dynamic_rotate %229 by %c1_i32_162 dim 1 : vector<4x256xf32>, i32 -> vector<4x256xf32>
    %255 = vector.broadcast %2 : vector<1x256xf32> to vector<4x256xf32>
    %256 = arith.mulf %254, %255 : vector<4x256xf32>
    %257 = arith.truncf %256 : vector<4x256xf32> to vector<4x256xbf16>
    %c1_163 = arith.constant 1 : index
    %c48_164 = arith.constant 48 : index
    %c0_165 = arith.constant 0 : index
    %258 = vector.load %arg8[%c1_163, %c48_164, %c0_165] : memref<2x160x256xbf16, #tpu.memory_space<vmem>>, vector<1x4x256xbf16>
    %259 = vector.shape_cast %258 : vector<1x4x256xbf16> to vector<4x256xbf16>
    %260 = vector.shape_cast %257 : vector<4x256xbf16> to vector<1x4x256xbf16>
    tpu.vector_store %arg8[%c1_163, %c48_164, %c0_165], %260 {strides = array<i32>} : memref<2x160x256xbf16, #tpu.memory_space<vmem>>, vector<1x4x256xbf16>,
    %261 = arith.truncf %229 : vector<4x256xf32> to vector<4x256xbf16>
    %c1_166 = arith.constant 1 : index
    %c64_167 = arith.constant 64 : index
    %c0_168 = arith.constant 0 : index
    %262 = vector.load %arg8[%c1_166, %c64_167, %c0_168] : memref<2x160x256xbf16, #tpu.memory_space<vmem>>, vector<1x4x256xbf16>
    %263 = vector.shape_cast %262 : vector<1x4x256xbf16> to vector<4x256xbf16>
    %264 = vector.shape_cast %261 : vector<4x256xbf16> to vector<1x4x256xbf16>
    tpu.vector_store %arg8[%c1_166, %c64_167, %c0_168], %264 {strides = array<i32>} : memref<2x160x256xbf16, #tpu.memory_space<vmem>>, vector<1x4x256xbf16>,
    %c255_i32_169 = arith.constant 255 : i32
    %265 = tpu.dynamic_rotate %229 by %c255_i32_169 dim 1 : vector<4x256xf32>, i32 -> vector<4x256xf32>
    %266 = vector.broadcast %3 : vector<1x256xf32> to vector<4x256xf32>
    %267 = arith.mulf %265, %266 : vector<4x256xf32>
    %268 = arith.truncf %267 : vector<4x256xf32> to vector<4x256xbf16>
    %c1_170 = arith.constant 1 : index
    %c80_171 = arith.constant 80 : index
    %c0_172 = arith.constant 0 : index
    %269 = vector.load %arg8[%c1_170, %c80_171, %c0_172] : memref<2x160x256xbf16, #tpu.memory_space<vmem>>, vector<1x4x256xbf16>
    %270 = vector.shape_cast %269 : vector<1x4x256xbf16> to vector<4x256xbf16>
    %271 = vector.shape_cast %268 : vector<4x256xbf16> to vector<1x4x256xbf16>
    tpu.vector_store %arg8[%c1_170, %c80_171, %c0_172], %271 {strides = array<i32>} : memref<2x160x256xbf16, #tpu.memory_space<vmem>>, vector<1x4x256xbf16>,
    %c1_i32_173 = arith.constant 1 : i32
    %272 = tpu.dynamic_rotate %235 by %c1_i32_173 dim 1 : vector<4x256xf32>, i32 -> vector<4x256xf32>
    %273 = vector.broadcast %2 : vector<1x256xf32> to vector<4x256xf32>
    %274 = arith.mulf %272, %273 : vector<4x256xf32>
    %275 = arith.truncf %274 : vector<4x256xf32> to vector<4x256xbf16>
    %c1_174 = arith.constant 1 : index
    %c96_175 = arith.constant 96 : index
    %c0_176 = arith.constant 0 : index
    %276 = vector.load %arg8[%c1_174, %c96_175, %c0_176] : memref<2x160x256xbf16, #tpu.memory_space<vmem>>, vector<1x4x256xbf16>
    %277 = vector.shape_cast %276 : vector<1x4x256xbf16> to vector<4x256xbf16>
    %278 = vector.shape_cast %275 : vector<4x256xbf16> to vector<1x4x256xbf16>
    tpu.vector_store %arg8[%c1_174, %c96_175, %c0_176], %278 {strides = array<i32>} : memref<2x160x256xbf16, #tpu.memory_space<vmem>>, vector<1x4x256xbf16>,
    %279 = arith.truncf %235 : vector<4x256xf32> to vector<4x256xbf16>
    %c1_177 = arith.constant 1 : index
    %c112_178 = arith.constant 112 : index
    %c0_179 = arith.constant 0 : index
    %280 = vector.load %arg8[%c1_177, %c112_178, %c0_179] : memref<2x160x256xbf16, #tpu.memory_space<vmem>>, vector<1x4x256xbf16>
    %281 = vector.shape_cast %280 : vector<1x4x256xbf16> to vector<4x256xbf16>
    %282 = vector.shape_cast %279 : vector<4x256xbf16> to vector<1x4x256xbf16>
    tpu.vector_store %arg8[%c1_177, %c112_178, %c0_179], %282 {strides = array<i32>} : memref<2x160x256xbf16, #tpu.memory_space<vmem>>, vector<1x4x256xbf16>,
    %c255_i32_180 = arith.constant 255 : i32
    %283 = tpu.dynamic_rotate %235 by %c255_i32_180 dim 1 : vector<4x256xf32>, i32 -> vector<4x256xf32>
    %284 = vector.broadcast %3 : vector<1x256xf32> to vector<4x256xf32>
    %285 = arith.mulf %283, %284 : vector<4x256xf32>
    %286 = arith.truncf %285 : vector<4x256xf32> to vector<4x256xbf16>
    %c1_181 = arith.constant 1 : index
    %c128_182 = arith.constant 128 : index
    %c0_183 = arith.constant 0 : index
    %287 = vector.load %arg8[%c1_181, %c128_182, %c0_183] : memref<2x160x256xbf16, #tpu.memory_space<vmem>>, vector<1x4x256xbf16>
    %288 = vector.shape_cast %287 : vector<1x4x256xbf16> to vector<4x256xbf16>
    %289 = vector.shape_cast %286 : vector<4x256xbf16> to vector<1x4x256xbf16>
    tpu.vector_store %arg8[%c1_181, %c128_182, %c0_183], %289 {strides = array<i32>} : memref<2x160x256xbf16, #tpu.memory_space<vmem>>, vector<1x4x256xbf16>,
    %c0_184 = arith.constant 0 : index
    %c0_185 = arith.constant 0 : index
    %290 = vector.load %arg3[%c0_184, %c0_185] : memref<4x144xbf16, #tpu.memory_space<vmem>>, vector<4x144xbf16>
    %c1_186 = arith.constant 1 : index
    %c0_187 = arith.constant 0 : index
    %c0_188 = arith.constant 0 : index
    %291 = vector.load %arg8[%c1_186, %c0_187, %c0_188] : memref<2x160x256xbf16, #tpu.memory_space<vmem>>, vector<1x144x256xbf16>
    %292 = vector.shape_cast %291 : vector<1x144x256xbf16> to vector<144x256xbf16>
    %cst_189 = arith.constant dense<0.000000e+00> : vector<4x256xf32>
    %293 = tpu.matmul %290, %292, %cst_189 {dimension_numbers = #tpu.dot_dimension_numbers<[1], [0], [0], [1], [0, 0, 1, 1], [], []>} : vector<4x144xbf16>, vector<144x256xbf16>, vector<4x256xf32> -> vector<4x256xf32>
    %c0_190 = arith.constant 0 : index
    %c0_191 = arith.constant 0 : index
    %294 = vector.load %arg4[%c0_190, %c0_191] : memref<4x1xf32, #tpu.memory_space<vmem>>, vector<4x1xf32>
    %295 = vector.broadcast %294 : vector<4x1xf32> to vector<4x256xf32>
    %296 = arith.addf %293, %295 : vector<4x256xf32>
    %cst_192 = arith.constant 0.000000e+00 : f32
    %297 = vector.broadcast %cst_192 : f32 to vector<4x256xf32>
    %298 = arith.cmpf oge, %296, %297 : vector<4x256xf32>
    %cst_193 = arith.constant 2.000000e-01 : f32
    %299 = vector.broadcast %cst_193 : f32 to vector<4x256xf32>
    %300 = arith.mulf %299, %296 : vector<4x256xf32>
    %301 = arith.select %298, %296, %300 : vector<4x256xi1>, vector<4x256xf32>
    %c16_i32_194 = arith.constant 16 : i32
    %302 = tpu.dynamic_rotate %301 by %c16_i32_194 dim 1 : vector<4x256xf32>, i32 -> vector<4x256xf32>
    %303 = vector.broadcast %0 : vector<1x256xf32> to vector<4x256xf32>
    %304 = arith.mulf %302, %303 : vector<4x256xf32>
    %c240_i32_195 = arith.constant 240 : i32
    %305 = tpu.dynamic_rotate %301 by %c240_i32_195 dim 1 : vector<4x256xf32>, i32 -> vector<4x256xf32>
    %306 = vector.broadcast %1 : vector<1x256xf32> to vector<4x256xf32>
    %307 = arith.mulf %305, %306 : vector<4x256xf32>
    %c1_i32_196 = arith.constant 1 : i32
    %308 = tpu.dynamic_rotate %304 by %c1_i32_196 dim 1 : vector<4x256xf32>, i32 -> vector<4x256xf32>
    %309 = vector.broadcast %2 : vector<1x256xf32> to vector<4x256xf32>
    %310 = arith.mulf %308, %309 : vector<4x256xf32>
    %311 = arith.truncf %310 : vector<4x256xf32> to vector<4x256xbf16>
    %c1_197 = arith.constant 1 : index
    %c0_198 = arith.constant 0 : index
    %c0_199 = arith.constant 0 : index
    %312 = vector.load %arg8[%c1_197, %c0_198, %c0_199] : memref<2x160x256xbf16, #tpu.memory_space<vmem>>, vector<1x4x256xbf16>
    %313 = vector.shape_cast %312 : vector<1x4x256xbf16> to vector<4x256xbf16>
    %314 = vector.shape_cast %311 : vector<4x256xbf16> to vector<1x4x256xbf16>
    tpu.vector_store %arg8[%c1_197, %c0_198, %c0_199], %314 {strides = array<i32>} : memref<2x160x256xbf16, #tpu.memory_space<vmem>>, vector<1x4x256xbf16>,
    %315 = arith.truncf %304 : vector<4x256xf32> to vector<4x256xbf16>
    %c1_200 = arith.constant 1 : index
    %c16_201 = arith.constant 16 : index
    %c0_202 = arith.constant 0 : index
    %316 = vector.load %arg8[%c1_200, %c16_201, %c0_202] : memref<2x160x256xbf16, #tpu.memory_space<vmem>>, vector<1x4x256xbf16>
    %317 = vector.shape_cast %316 : vector<1x4x256xbf16> to vector<4x256xbf16>
    %318 = vector.shape_cast %315 : vector<4x256xbf16> to vector<1x4x256xbf16>
    tpu.vector_store %arg8[%c1_200, %c16_201, %c0_202], %318 {strides = array<i32>} : memref<2x160x256xbf16, #tpu.memory_space<vmem>>, vector<1x4x256xbf16>,
    %c255_i32_203 = arith.constant 255 : i32
    %319 = tpu.dynamic_rotate %304 by %c255_i32_203 dim 1 : vector<4x256xf32>, i32 -> vector<4x256xf32>
    %320 = vector.broadcast %3 : vector<1x256xf32> to vector<4x256xf32>
    %321 = arith.mulf %319, %320 : vector<4x256xf32>
    %322 = arith.truncf %321 : vector<4x256xf32> to vector<4x256xbf16>
    %c1_204 = arith.constant 1 : index
    %c32_205 = arith.constant 32 : index
    %c0_206 = arith.constant 0 : index
    %323 = vector.load %arg8[%c1_204, %c32_205, %c0_206] : memref<2x160x256xbf16, #tpu.memory_space<vmem>>, vector<1x4x256xbf16>
    %324 = vector.shape_cast %323 : vector<1x4x256xbf16> to vector<4x256xbf16>
    %325 = vector.shape_cast %322 : vector<4x256xbf16> to vector<1x4x256xbf16>
    tpu.vector_store %arg8[%c1_204, %c32_205, %c0_206], %325 {strides = array<i32>} : memref<2x160x256xbf16, #tpu.memory_space<vmem>>, vector<1x4x256xbf16>,
    %c1_i32_207 = arith.constant 1 : i32
    %326 = tpu.dynamic_rotate %301 by %c1_i32_207 dim 1 : vector<4x256xf32>, i32 -> vector<4x256xf32>
    %327 = vector.broadcast %2 : vector<1x256xf32> to vector<4x256xf32>
    %328 = arith.mulf %326, %327 : vector<4x256xf32>
    %329 = arith.truncf %328 : vector<4x256xf32> to vector<4x256xbf16>
    %c1_208 = arith.constant 1 : index
    %c48_209 = arith.constant 48 : index
    %c0_210 = arith.constant 0 : index
    %330 = vector.load %arg8[%c1_208, %c48_209, %c0_210] : memref<2x160x256xbf16, #tpu.memory_space<vmem>>, vector<1x4x256xbf16>
    %331 = vector.shape_cast %330 : vector<1x4x256xbf16> to vector<4x256xbf16>
    %332 = vector.shape_cast %329 : vector<4x256xbf16> to vector<1x4x256xbf16>
    tpu.vector_store %arg8[%c1_208, %c48_209, %c0_210], %332 {strides = array<i32>} : memref<2x160x256xbf16, #tpu.memory_space<vmem>>, vector<1x4x256xbf16>,
    %333 = arith.truncf %301 : vector<4x256xf32> to vector<4x256xbf16>
    %c1_211 = arith.constant 1 : index
    %c64_212 = arith.constant 64 : index
    %c0_213 = arith.constant 0 : index
    %334 = vector.load %arg8[%c1_211, %c64_212, %c0_213] : memref<2x160x256xbf16, #tpu.memory_space<vmem>>, vector<1x4x256xbf16>
    %335 = vector.shape_cast %334 : vector<1x4x256xbf16> to vector<4x256xbf16>
    %336 = vector.shape_cast %333 : vector<4x256xbf16> to vector<1x4x256xbf16>
    tpu.vector_store %arg8[%c1_211, %c64_212, %c0_213], %336 {strides = array<i32>} : memref<2x160x256xbf16, #tpu.memory_space<vmem>>, vector<1x4x256xbf16>,
    %c255_i32_214 = arith.constant 255 : i32
    %337 = tpu.dynamic_rotate %301 by %c255_i32_214 dim 1 : vector<4x256xf32>, i32 -> vector<4x256xf32>
    %338 = vector.broadcast %3 : vector<1x256xf32> to vector<4x256xf32>
    %339 = arith.mulf %337, %338 : vector<4x256xf32>
    %340 = arith.truncf %339 : vector<4x256xf32> to vector<4x256xbf16>
    %c1_215 = arith.constant 1 : index
    %c80_216 = arith.constant 80 : index
    %c0_217 = arith.constant 0 : index
    %341 = vector.load %arg8[%c1_215, %c80_216, %c0_217] : memref<2x160x256xbf16, #tpu.memory_space<vmem>>, vector<1x4x256xbf16>
    %342 = vector.shape_cast %341 : vector<1x4x256xbf16> to vector<4x256xbf16>
    %343 = vector.shape_cast %340 : vector<4x256xbf16> to vector<1x4x256xbf16>
    tpu.vector_store %arg8[%c1_215, %c80_216, %c0_217], %343 {strides = array<i32>} : memref<2x160x256xbf16, #tpu.memory_space<vmem>>, vector<1x4x256xbf16>,
    %c1_i32_218 = arith.constant 1 : i32
    %344 = tpu.dynamic_rotate %307 by %c1_i32_218 dim 1 : vector<4x256xf32>, i32 -> vector<4x256xf32>
    %345 = vector.broadcast %2 : vector<1x256xf32> to vector<4x256xf32>
    %346 = arith.mulf %344, %345 : vector<4x256xf32>
    %347 = arith.truncf %346 : vector<4x256xf32> to vector<4x256xbf16>
    %c1_219 = arith.constant 1 : index
    %c96_220 = arith.constant 96 : index
    %c0_221 = arith.constant 0 : index
    %348 = vector.load %arg8[%c1_219, %c96_220, %c0_221] : memref<2x160x256xbf16, #tpu.memory_space<vmem>>, vector<1x4x256xbf16>
    %349 = vector.shape_cast %348 : vector<1x4x256xbf16> to vector<4x256xbf16>
    %350 = vector.shape_cast %347 : vector<4x256xbf16> to vector<1x4x256xbf16>
    tpu.vector_store %arg8[%c1_219, %c96_220, %c0_221], %350 {strides = array<i32>} : memref<2x160x256xbf16, #tpu.memory_space<vmem>>, vector<1x4x256xbf16>,
    %351 = arith.truncf %307 : vector<4x256xf32> to vector<4x256xbf16>
    %c1_222 = arith.constant 1 : index
    %c112_223 = arith.constant 112 : index
    %c0_224 = arith.constant 0 : index
    %352 = vector.load %arg8[%c1_222, %c112_223, %c0_224] : memref<2x160x256xbf16, #tpu.memory_space<vmem>>, vector<1x4x256xbf16>
    %353 = vector.shape_cast %352 : vector<1x4x256xbf16> to vector<4x256xbf16>
    %354 = vector.shape_cast %351 : vector<4x256xbf16> to vector<1x4x256xbf16>
    tpu.vector_store %arg8[%c1_222, %c112_223, %c0_224], %354 {strides = array<i32>} : memref<2x160x256xbf16, #tpu.memory_space<vmem>>, vector<1x4x256xbf16>,
    %c255_i32_225 = arith.constant 255 : i32
    %355 = tpu.dynamic_rotate %307 by %c255_i32_225 dim 1 : vector<4x256xf32>, i32 -> vector<4x256xf32>
    %356 = vector.broadcast %3 : vector<1x256xf32> to vector<4x256xf32>
    %357 = arith.mulf %355, %356 : vector<4x256xf32>
    %358 = arith.truncf %357 : vector<4x256xf32> to vector<4x256xbf16>
    %c1_226 = arith.constant 1 : index
    %c128_227 = arith.constant 128 : index
    %c0_228 = arith.constant 0 : index
    %359 = vector.load %arg8[%c1_226, %c128_227, %c0_228] : memref<2x160x256xbf16, #tpu.memory_space<vmem>>, vector<1x4x256xbf16>
    %360 = vector.shape_cast %359 : vector<1x4x256xbf16> to vector<4x256xbf16>
    %361 = vector.shape_cast %358 : vector<4x256xbf16> to vector<1x4x256xbf16>
    tpu.vector_store %arg8[%c1_226, %c128_227, %c0_228], %361 {strides = array<i32>} : memref<2x160x256xbf16, #tpu.memory_space<vmem>>, vector<1x4x256xbf16>,
    %c0_229 = arith.constant 0 : index
    %c0_230 = arith.constant 0 : index
    %362 = vector.load %arg5[%c0_229, %c0_230] : memref<8x160xbf16, #tpu.memory_space<vmem>>, vector<8x160xbf16>
    %c1_231 = arith.constant 1 : index
    %c0_232 = arith.constant 0 : index
    %c0_233 = arith.constant 0 : index
    %363 = vector.load %arg8[%c1_231, %c0_232, %c0_233] : memref<2x160x256xbf16, #tpu.memory_space<vmem>>, vector<1x160x256xbf16>
    %364 = vector.shape_cast %363 : vector<1x160x256xbf16> to vector<160x256xbf16>
    %cst_234 = arith.constant dense<0.000000e+00> : vector<8x256xf32>
    %365 = tpu.matmul %362, %364, %cst_234 {dimension_numbers = #tpu.dot_dimension_numbers<[1], [0], [0], [1], [0, 0, 1, 1], [], []>} : vector<8x160xbf16>, vector<160x256xbf16>, vector<8x256xf32> -> vector<8x256xf32>
    %c0_235 = arith.constant 0 : index
    %c0_236 = arith.constant 0 : index
    %366 = vector.load %arg6[%c0_235, %c0_236] : memref<8x1xf32, #tpu.memory_space<vmem>>, vector<8x1xf32>
    %367 = vector.broadcast %366 : vector<8x1xf32> to vector<8x256xf32>
    %368 = arith.addf %365, %367 : vector<8x256xf32>
    %c1_237 = arith.constant 1 : index
    %c0_238 = arith.constant 0 : index
    %c0_239 = arith.constant 0 : index
    %369 = vector.load %arg7[%c1_237, %c0_238, %c0_239] : memref<2x8x256xf32, #tpu.memory_space<vmem>>, vector<1x8x256xf32>
    %370 = vector.shape_cast %369 : vector<1x8x256xf32> to vector<8x256xf32>
    %371 = vector.shape_cast %368 : vector<8x256xf32> to vector<1x8x256xf32>
    tpu.vector_store %arg7[%c1_237, %c0_238, %c0_239], %371 {strides = array<i32>} : memref<2x8x256xf32, #tpu.memory_space<vmem>>, vector<1x8x256xf32>,
    return
  }
  func.func @transform_0(%arg0: i32) -> (i32, i32, i32) {
    %c0_i32 = arith.constant 0 : i32
    %c0_i32_0 = arith.constant 0 : i32
    %c0_i32_1 = arith.constant 0 : i32
    return %arg0, %c0_i32, %c0_i32_0 : i32, i32, i32
  }
  func.func @transform_1(%arg0: i32) -> (i32, i32) {
    %c0_i32 = arith.constant 0 : i32
    %c0_i32_0 = arith.constant 0 : i32
    %c0_i32_1 = arith.constant 0 : i32
    return %c0_i32, %c0_i32_0 : i32, i32
  }
  func.func @transform_2(%arg0: i32) -> (i32, i32) {
    %c0_i32 = arith.constant 0 : i32
    %c0_i32_0 = arith.constant 0 : i32
    %c0_i32_1 = arith.constant 0 : i32
    return %c0_i32, %c0_i32_0 : i32, i32
  }
  func.func @transform_3(%arg0: i32) -> (i32, i32) {
    %c0_i32 = arith.constant 0 : i32
    %c0_i32_0 = arith.constant 0 : i32
    %c0_i32_1 = arith.constant 0 : i32
    return %c0_i32, %c0_i32_0 : i32, i32
  }
  func.func @transform_4(%arg0: i32) -> (i32, i32) {
    %c0_i32 = arith.constant 0 : i32
    %c0_i32_0 = arith.constant 0 : i32
    %c0_i32_1 = arith.constant 0 : i32
    return %c0_i32, %c0_i32_0 : i32, i32
  }
  func.func @transform_5(%arg0: i32) -> (i32, i32) {
    %c0_i32 = arith.constant 0 : i32
    %c0_i32_0 = arith.constant 0 : i32
    %c0_i32_1 = arith.constant 0 : i32
    return %c0_i32, %c0_i32_0 : i32, i32
  }
  func.func @transform_6(%arg0: i32) -> (i32, i32, i32) {
    %c0_i32 = arith.constant 0 : i32
    %c0_i32_0 = arith.constant 0 : i32
    %c0_i32_1 = arith.constant 0 : i32
    return %arg0, %c0_i32, %c0_i32_0 : i32, i32, i32
  }
}

</mosaic_0001>

<bundles_post_ra>
// kernel: tpu_custom_call.1
= control target key start
LH: loop header
LB: loop body
LE: loop exit
PB: predicated region body
PF: predicated region fallthrough
CT: control target
= control target key end

     0   :  { %11 = vsyncpa [#allocation4], 0  ;;  %s1463_s0 = inlined_call_operand.vmem [shape: bf16[2,4,256], index: 0, kind: input, shape index: {}]   ;;  %s1464_s1 = inlined_call_operand.vmem [shape: f32[4,256], index: 1, kind: input, shape index: {}]   ;;  %s1465_s2 = inlined_call_operand.hbm [shape: bf16[4,144], index: 2, kind: input, shape index: {}]   ;;  %s1466_s3 = inlined_call_operand.vmem [shape: f32[4,1], index: 3, kind: input, shape index: {}]   ;;  %s1467_s4 = inlined_call_operand.vmem [shape: bf16[8,160], index: 4, kind: input, shape index: {}]   ;;  %s1468_s5 = inlined_call_operand.vmem [shape: f32[8,1], index: 5, kind: input, shape index: {}]   ;;  %s1469_s6 = inlined_call_operand.hbm [shape: f32[2,8,256], index: 6, kind: output, shape index: {}]  }
   0x1   :  { %12 = vsyncpa [#allocation5], 0  ;;  %s1003_s21 = smov [#allocation3]   ;;  %s955_s25 = scalar_lea.hbm %s1465_s2, 64 }
   0x2   :  { %s23_s22 = sshll.u32 %s1003_s21, 4  ;;  %p956_p0 = scmp.ne.s32.totalorder %s1465_s2, %s955_s25  ;;  %s24_s22 = int_to_ptr.vmem [resolvable:$true] %s23_s22 }
   0x3   :  { %p959_p1 = scmp.lt.u32.totalorder %s955_s25, %s1465_s2 }
   0x5   :  { %p961_p2 = pnand %p959_p1, %p956_p0 }
   0x7   :  { %964 = shalt.err (!%p961_p2)
}
   0x8   :  { %s965_s30 = scalar_lea.vmem %s24_s22, 64  ;;  %p970_p4 = scmp.lt.s32.totalorder %s24_s22, %s24_s22 }
   0x9   :  { %p966_p3 = scmp.ne.s32.totalorder %s24_s22, %s965_s30  ;;  %p971_p5 = scmp.lt.s32.totalorder %s965_s30, %s965_s30 }
   0xb   :  { %p972_p6 = por %p971_p5, %p970_p4 }
   0xd   :  { %p973_p7 = pnand %p972_p6, %p966_p3 }
   0xf   :  { %976 = shalt.err (!%p973_p7)
}
  0x10   :  { %26 = dma.hbm_to_vmem [thread:$0]  %s1465_s2, 64, %s24_s22, [#allocation4]  }
  0x11   :  { %999 = dma.done.wait [#allocation4], 64  }
  0x12   :  { %1000 = vsyncadd [#allocation4], 4294967232  ;;  %v69_v0 = vlaneseq  ;;  %v1004_v1 = vmov 1983009808   ;;  %v64_v6 = vld [vmem:[%s1463_s0] sm:$0xf] }
  0x13   :  { %v67_v2 = vunpack.c.l.s4 %v1004_v1  ;;  %v935_v7 = vld [vmem:[%s1463_s0 + $0x4] sm:$0xf]  ;;  %v78_v8 = vunpack.c.l.bf16 %v64_v6  ;;  %929 = vst.sshfl [vmem:[#allocation2 + $0x90] sm:$0x3 pattern:$0x76325410] %v64_v6 }
  0x14   :  { %v1060_v4 = vshrl.u32 %v69_v0, 7  ;;  %936 = vst.sshfl [vmem:[#allocation2 + $0x130] sm:$0x3 pattern:$0x76325410] %v935_v7  ;;  %v537_v11 = vunpack.c.l.bf16 %v935_v7  ;;  %s1005_s2 = smov 16  }
  0x15   :  { %v68_v3 = vunpack.c.0.s8 %v67_v2  ;;  %vm79_vm0 = vcmp.ge.f32.partialorder %v78_v8, 0.0  ;;  %v80_v12 = vmul.f32 0.2, %v78_v8  ;;  %s1006_s0 = smov 112   ;;  %v1007_v20 = vmov 0   ;;  %s1008_s17 = smov 1  }
  0x16   :  { %vm538_vm1 = vcmp.ge.f32.partialorder %v537_v11, 0.0  ;;  %v539_v15 = vmul.f32 0.2, %v537_v11  ;;  %45 = vst [vmem:[#allocation2 + $0x8] sm:$0xfc] %v1007_v20  ;;  %951 = vset.pattern.permute.xlu0 %v1007_v20  ;;  %952 = vset.pattern.permute.xlu1 %v1007_v20  ;;  %v1102_v25 = vand.u32 127, %v69_v0 }
  0x17   :  { %v71_v5 = vsub.s32 %v68_v3, %v1060_v4  ;;  %v1069_v16 = vsel %vm79_vm0, %v78_v8, %v80_v12  ;;  %44 = vst [vmem:[#allocation2] sm:$0xfc] %v1007_v20  ;;  %46 = vst [vmem:[#allocation2 + $0x10] sm:$0xfc] %v1007_v20  ;;  %v1105_v26 = vsub.s32 0, %v1060_v4  ;;  %v1108_v27 = vsub.s32 1, %v1060_v4 }
  0x18   :  { %85 = vrot.lane.b32.xlu0 %v1069_v16, %s1005_s2  ;;  %v191_v17 = vpack.c.bf16 %v1069_v16, %v1069_v16  ;;  %v1077_v18 = vcombine.high %v1069_v16, %v1069_v16  ;;  %107 = vrot.lane.b32.xlu1 %v1069_v16, %s1006_s0  ;;  %v1081_v19 = vsel %vm538_vm1, %v537_v11, %v539_v15  ;;  %v37_v28 = vld [vmem:[%s1464_s1] ss:$4 sm:$0x3]  ;;  %v926_v29 = vld [vmem:[%s1464_s1 + $0x1] ss:$4 sm:$0x3] }
  0x19   :  { %v531_v9 = vrot.slane %v935_v7, %v71_v5  ;;  %v72_v10 = vrot.slane %v64_v6, %v71_v5  ;;  %47 = vst [vmem:[#allocation2 + $0x18] sm:$0xfc] %v1007_v20  ;;  %48 = vst [vmem:[#allocation2 + $0x20] sm:$0xfc] %v1007_v20  ;;  %v1085_v21 = vcombine.high %v1081_v19, %v1081_v19  ;;  %vm91_vm2 = vcmp.lt.s32.totalorder %v1102_v25, 16  ;;  %s1009_s18 = smov 127  }
  0x1a   :  { %49 = vst [vmem:[#allocation2 + $0x28] sm:$0xfc] %v1007_v20  ;;  %50 = vst [vmem:[#allocation2 + $0x30] sm:$0xfc] %v1007_v20  ;;  %v600_v22 = vpack.c.bf16 %v1081_v19, %v1081_v19  ;;  %v192_v23 = vpack.c.bf16 %v1077_v18, %v1077_v18  ;;  %v1118_v32 = vrot.slane %v37_v28, %v1105_v26  ;;  %vm111_vm3 = vcmp.lt.s32.totalorder %v1102_v25, 112 }
  0x1b   :  { %v532_v13 = vcombine.high %v531_v9, %v531_v9  ;;  %v73_v14 = vcombine.high %v72_v10, %v72_v10  ;;  %51 = vst [vmem:[#allocation2 + $0x38] sm:$0xfc] %v1007_v20  ;;  %52 = vst [vmem:[#allocation2 + $0x40] sm:$0xfc] %v1007_v20  ;;  %v601_v24 = vpack.c.bf16 %v1085_v21, %v1085_v21  ;;  %vm270_vm4 = vcmask 130048  }
  0x1c   :  { %53 = vst [vmem:[#allocation2 + $0x48] sm:$0xfc] %v1007_v20  ;;  %54 = vst [vmem:[#allocation2 + $0x50] sm:$0xfc] %v1007_v20  ;;  %87 = vrot.lane.b32.xlu0 %v1077_v18, %s1005_s2  ;;  %109 = vrot.lane.b32.xlu1 %v1077_v18, %s1006_s0  ;;  %v1121_v33 = vrot.slane %v37_v28, %v1108_v27  ;;  %v1125_v34 = vrot.slane %v926_v29, %v1105_v26  ;;  %vm131_vm5 = vcmp.lt.s32.totalorder %v1102_v25, 1  ;;  %vm454_vm11 = vcmask 261120  }
  0x1d   :  { %536 = vst [vmem:[#allocation2 + $0x138] sm:$0x3] %v532_v13  ;;  %77 = vst [vmem:[#allocation2 + $0x98] sm:$0x3] %v73_v14  ;;  %v1128_v35 = vrot.slane %v926_v29, %v1108_v27  ;;  %vm159_vm6 = vcmp.lt.s32.totalorder %v1102_v25, 127 }
  0x1e   :  { %55 = vst [vmem:[#allocation2 + $0x58] sm:$0xfc] %v1007_v20  ;;  %56 = vst [vmem:[#allocation2 + $0x60] sm:$0xfc] %v1007_v20 }
  0x1f   :  { %57 = vst [vmem:[#allocation2 + $0x68] sm:$0xfc] %v1007_v20  ;;  %58 = vst [vmem:[#allocation2 + $0x70] sm:$0xfc] %v1007_v20 }
  0x20   :  { %59 = vst [vmem:[#allocation2 + $0x78] sm:$0xfc] %v1007_v20  ;;  %60 = vst [vmem:[#allocation2 + $0x80] sm:$0xfc] %v1007_v20  ;;  %546 = vrot.lane.b32.xlu1 %v1085_v21, %s1005_s2  ;;  %544 = vrot.lane.b32.xlu0 %v1081_v19, %s1005_s2 }
  0x21   :  { %61 = vst [vmem:[#allocation2 + $0x88] sm:$0xfc] %v1007_v20  ;;  %62 = vst [vmem:[#allocation2 + $0x90] sm:$0xfc] %v1007_v20 }
  0x22   :  { %63 = vst [vmem:[#allocation2 + $0x98] sm:$0xfc] %v1007_v20  ;;  %502 = vst [vmem:[#allocation2 + $0xa0] sm:$0xfc] %v1007_v20 }
  0x23   :  { %503 = vst [vmem:[#allocation2 + $0xa8] sm:$0xfc] %v1007_v20  ;;  %504 = vst [vmem:[#allocation2 + $0xb0] sm:$0xfc] %v1007_v20 }
  0x24   :  { %505 = vst [vmem:[#allocation2 + $0xb8] sm:$0xfc] %v1007_v20  ;;  %506 = vst [vmem:[#allocation2 + $0xc0] sm:$0xfc] %v1007_v20 }
  0x25   :  { %507 = vst [vmem:[#allocation2 + $0xc8] sm:$0xfc] %v1007_v20  ;;  %508 = vst [vmem:[#allocation2 + $0xd0] sm:$0xfc] %v1007_v20 }
  0x26   :  { %509 = vst [vmem:[#allocation2 + $0xd8] sm:$0xfc] %v1007_v20  ;;  %510 = vst [vmem:[#allocation2 + $0xe0] sm:$0xfc] %v1007_v20 }
  0x27   :  { %511 = vst [vmem:[#allocation2 + $0xe8] sm:$0xfc] %v1007_v20  ;;  %512 = vst [vmem:[#allocation2 + $0xf0] sm:$0xfc] %v1007_v20 }
  0x28   :  { %513 = vst [vmem:[#allocation2 + $0xf8] sm:$0xfc] %v1007_v20  ;;  %514 = vst [vmem:[#allocation2 + $0x100] sm:$0xfc] %v1007_v20 }
  0x29   :  { %515 = vst [vmem:[#allocation2 + $0x108] sm:$0xfc] %v1007_v20  ;;  %516 = vst [vmem:[#allocation2 + $0x110] sm:$0xfc] %v1007_v20 }
  0x2a   :  { %517 = vst [vmem:[#allocation2 + $0x118] sm:$0xfc] %v1007_v20  ;;  %518 = vst [vmem:[#allocation2 + $0x120] sm:$0xfc] %v1007_v20 }
  0x2b   :  { %519 = vst [vmem:[#allocation2 + $0x128] sm:$0xfc] %v1007_v20  ;;  %520 = vst [vmem:[#allocation2 + $0x130] sm:$0xfc] %v1007_v20 }
  0x2c   :  { %521 = vst [vmem:[#allocation2 + $0x138] sm:$0xfc] %v1007_v20  ;;  %193 = vst [vmem:[#allocation2 + $0x40] sm:$0x3] %v191_v17 }
  0x2d   :  { %602 = vst [vmem:[#allocation2 + $0xe0] sm:$0x3] %v600_v22  ;;  %194 = vst [vmem:[#allocation2 + $0x48] sm:$0x3] %v192_v23 }
  0x2e   :  { %603 = vst [vmem:[#allocation2 + $0xe8] sm:$0x3] %v601_v24  ;;  %v1172_v58 = vld.sshfl [vmem:[#allocation3] sm:$0x33 pattern:$0x76325410] }
  0x2f   :  { %v1176_v59 = vcombine.high %v1172_v58, %v1172_v58  ;;  %v927_v60 = vld [vmem:[%s1464_s1 + $0x2] ss:$4 sm:$0x3]  ;;  %v928_v5 = vld [vmem:[%s1464_s1 + $0x3] ss:$4 sm:$0x3] }
  0x30   :  { %v1193_v61 = vrot.slane %v927_v60, %v1105_v26  ;;  %v1196_v62 = vrot.slane %v927_v60, %v1108_v27  ;;  %v1213_v12 = vrot.slane %v928_v5, %v1105_v26  ;;  %v1216_v13 = vrot.slane %v928_v5, %v1108_v27 }
  0x31   :  { %931 = vmatprep.mubr.msk.bf16.mxu0 %vm270_vm4, %v1176_v59 }
  0x8a   :  { %v86_v30 = vpop.permute.xlu0 %85  ;;  %v108_v31 = vpop.permute.xlu1 %107 }
  0x8e   :  { %v88_v36 = vpop.permute.xlu0 %87  ;;  %v110_v37 = vpop.permute.xlu1 %109 }
  0x8f   :  { %v92_v38 = vsel %vm91_vm2, %v86_v30, %v88_v36  ;;  %v93_v39 = vsel %vm91_vm2, %v88_v36, %v86_v30  ;;  %v112_v40 = vsel %vm111_vm3, %v108_v31, %v110_v37  ;;  %v113_v41 = vsel %vm111_vm3, %v110_v37, %v108_v31  ;;  %v254_v37 = vld [vmem:[%s1466_s3] sm:$0xf] }
  0x90   :  { %v105_v42 = vmul.f32 %v1118_v32, %v93_v39  ;;  %v106_v43 = vmul.f32 %v1121_v33, %v92_v38  ;;  %v125_v44 = vmul.f32 %v1125_v34, %v112_v40  ;;  %v126_v45 = vmul.f32 %v1128_v35, %v113_v41 }
  0x92   :  { %v151_v46 = vpack.c.bf16 %v105_v42, %v105_v42  ;;  %v152_v47 = vpack.c.bf16 %v106_v43, %v106_v43  ;;  %129 = vrot.lane.b32.xlu1 %v106_v43, %s1008_s17  ;;  %127 = vrot.lane.b32.xlu0 %v105_v42, %s1008_s17  ;;  %v219_v48 = vpack.c.bf16 %v125_v44, %v125_v44  ;;  %v547_v49 = vpop.permute.xlu1 %546  ;;  %v545_v50 = vpop.permute.xlu0 %544 }
  0x93   :  { %v220_v51 = vpack.c.bf16 %v126_v45, %v126_v45  ;;  %v548_v52 = vsel %vm91_vm2, %v545_v50, %v547_v49  ;;  %v549_v53 = vsel %vm91_vm2, %v547_v49, %v545_v50 }
  0x94   :  { %153 = vst [vmem:[#allocation2 + $0x10] sm:$0x3] %v151_v46  ;;  %154 = vst [vmem:[#allocation2 + $0x18] sm:$0x3] %v152_v47  ;;  %v550_v54 = vmul.f32 %v549_v53, %v1118_v32  ;;  %v551_v55 = vmul.f32 %v548_v52, %v1121_v33 }
  0x95   :  { %221 = vst [vmem:[#allocation2 + $0x70] sm:$0x3] %v219_v48  ;;  %222 = vst [vmem:[#allocation2 + $0x78] sm:$0x3] %v220_v51 }
  0x96   :  { %554 = vrot.lane.b32.xlu1 %v1085_v21, %s1006_s0  ;;  %552 = vrot.lane.b32.xlu0 %v1081_v19, %s1006_s0  ;;  %v572_v56 = vpack.c.bf16 %v550_v54, %v550_v54  ;;  %v573_v57 = vpack.c.bf16 %v551_v55, %v551_v55 }
  0x98   :  { %574 = vst [vmem:[#allocation2 + $0xb0] sm:$0x3] %v572_v56  ;;  %575 = vst [vmem:[#allocation2 + $0xb8] sm:$0x3] %v573_v57 }
  0x9a   :  { %157 = vrot.lane.b32.xlu1 %v106_v43, %s1009_s18  ;;  %155 = vrot.lane.b32.xlu0 %v105_v42, %s1009_s18 }
  0x9b   :  { %v239_v40 = vld [vmem:[#allocation2 + $0x18] sm:$0xff]  ;;  %v238_v49 = vld [vmem:[#allocation2 + $0x10] sm:$0xff] }
  0x9e   :  { %181 = vrot.lane.b32.xlu1 %v1077_v18, %s1008_s17  ;;  %179 = vrot.lane.b32.xlu0 %v1069_v16, %s1008_s17 }
  0xa2   :  { %197 = vrot.lane.b32.xlu1 %v1077_v18, %s1009_s18  ;;  %195 = vrot.lane.b32.xlu0 %v1069_v16, %s1009_s18 }
  0xa6   :  { %209 = vrot.lane.b32.xlu1 %v126_v45, %s1008_s17  ;;  %207 = vrot.lane.b32.xlu0 %v125_v44, %s1008_s17 }
  0xaa   :  { %225 = vrot.lane.b32.xlu1 %v126_v45, %s1009_s18  ;;  %223 = vrot.lane.b32.xlu0 %v125_v44, %s1009_s18 }
  0xae   :  { %562 = vrot.lane.b32.xlu1 %v551_v55, %s1008_s17  ;;  %560 = vrot.lane.b32.xlu0 %v550_v54, %s1008_s17 }
  0xb2   :  { %578 = vrot.lane.b32.xlu1 %v551_v55, %s1009_s18  ;;  %576 = vrot.lane.b32.xlu0 %v550_v54, %s1009_s18  ;;  %v663_v54 = vld [vmem:[%s1466_s3] sm:$0xf] }
  0xb6   :  { %590 = vrot.lane.b32.xlu1 %v1085_v21, %s1008_s17  ;;  %588 = vrot.lane.b32.xlu0 %v1081_v19, %s1008_s17 }
  0xba   :  { %606 = vrot.lane.b32.xlu1 %v1085_v21, %s1009_s18  ;;  %604 = vrot.lane.b32.xlu0 %v1081_v19, %s1009_s18 }
 0x104   :  { %v130_v63 = vpop.permute.xlu1 %129  ;;  %v128_v0 = vpop.permute.xlu0 %127 }
 0x105   :  { %v132_v1 = vsel %vm131_vm5, %v128_v0, %v130_v63  ;;  %v133_v2 = vsel %vm131_vm5, %v130_v63, %v128_v0 }
 0x106   :  { %v145_v3 = vmul.f32 %v1193_v61, %v133_v2  ;;  %v146_v4 = vmul.f32 %v1196_v62, %v132_v1 }
 0x108   :  { %v147_v6 = vpack.c.bf16 %v145_v3, %v145_v3  ;;  %v148_v7 = vpack.c.bf16 %v146_v4, %v146_v4  ;;  %v555_v8 = vpop.permute.xlu1 %554  ;;  %v553_v9 = vpop.permute.xlu0 %552 }
 0x109   :  { %v556_v10 = vsel %vm111_vm3, %v553_v9, %v555_v8  ;;  %v557_v11 = vsel %vm111_vm3, %v555_v8, %v553_v9  ;;  %v245_v9 = vld [vmem:[#allocation2 + $0x48] sm:$0xff] }
 0x10a   :  { %149 = vst [vmem:[#allocation2] sm:$0x3] %v147_v6  ;;  %150 = vst [vmem:[#allocation2 + $0x8] sm:$0x3] %v148_v7  ;;  %v558_v14 = vmul.f32 %v556_v10, %v1125_v34  ;;  %v559_v15 = vmul.f32 %v557_v11, %v1128_v35 }
 0x10c   :  { %v628_v16 = vpack.c.bf16 %v558_v14, %v558_v14  ;;  %v629_v17 = vpack.c.bf16 %v559_v15, %v559_v15  ;;  %v158_v18 = vpop.permute.xlu1 %157  ;;  %618 = vrot.lane.b32.xlu1 %v559_v15, %s1008_s17  ;;  %616 = vrot.lane.b32.xlu0 %v558_v14, %s1008_s17  ;;  %v156_v19 = vpop.permute.xlu0 %155 }
 0x10d   :  { %v160_v20 = vsel %vm159_vm6, %v156_v19, %v158_v18  ;;  %v161_v21 = vsel %vm159_vm6, %v158_v18, %v156_v19 }
 0x10e   :  { %630 = vst [vmem:[#allocation2 + $0x110] sm:$0x3] %v628_v16  ;;  %631 = vst [vmem:[#allocation2 + $0x118] sm:$0x3] %v629_v17  ;;  %v173_v22 = vmul.f32 %v1213_v12, %v160_v20  ;;  %v174_v23 = vmul.f32 %v1216_v13, %v161_v21  ;;  %v244_v16 = vld [vmem:[#allocation2 + $0x40] sm:$0xff] }
 0x110   :  { %v175_v24 = vpack.c.bf16 %v173_v22, %v173_v22  ;;  %v176_v26 = vpack.c.bf16 %v174_v23, %v174_v23  ;;  %v182_v27 = vpop.permute.xlu1 %181  ;;  %634 = vrot.lane.b32.xlu1 %v559_v15, %s1009_s18  ;;  %632 = vrot.lane.b32.xlu0 %v558_v14, %s1009_s18  ;;  %v180_v28 = vpop.permute.xlu0 %179 }
 0x111   :  { %v183_v29 = vsel %vm131_vm5, %v180_v28, %v182_v27  ;;  %v184_v30 = vsel %vm131_vm5, %v182_v27, %v180_v28  ;;  %v237_v31 = vld [vmem:[#allocation2 + $0x8] sm:$0xff]  ;;  %v236_v36 = vld [vmem:[#allocation2] sm:$0xff] }
 0x112   :  { %177 = vst [vmem:[#allocation2 + $0x20] sm:$0x3] %v175_v24  ;;  %178 = vst [vmem:[#allocation2 + $0x28] sm:$0x3] %v176_v26  ;;  %v185_v38 = vmul.f32 %v184_v30, %v1193_v61  ;;  %v186_v39 = vmul.f32 %v183_v29, %v1196_v62  ;;  %274 = vmatprep.subr.bf16.mxu0 %v237_v31 }
 0x113   :  { %275 = vmatpush1.bf16.msra.mxu0 %v236_v36 }
 0x114   :  { %v187_v41 = vpack.c.bf16 %v185_v38, %v185_v38  ;;  %v188_v42 = vpack.c.bf16 %v186_v39, %v186_v39  ;;  %v198_v43 = vpop.permute.xlu1 %197  ;;  %276 = vmatprep.subr.bf16.mxu0 %v239_v40  ;;  %v196_v44 = vpop.permute.xlu0 %195  ;;  %257 = vperm.xlu0 %951, %v254_v37  }
 0x115   :  { %v199_v45 = vsel %vm159_vm6, %v196_v44, %v198_v43  ;;  %v200_v46 = vsel %vm159_vm6, %v198_v43, %v196_v44  ;;  %666 = vperm.xlu1 %952, %v663_v54  }
 0x116   :  { %189 = vst [vmem:[#allocation2 + $0x30] sm:$0x3] %v187_v41  ;;  %190 = vst [vmem:[#allocation2 + $0x38] sm:$0x3] %v188_v42  ;;  %v201_v47 = vmul.f32 %v199_v45, %v1213_v12  ;;  %v202_v48 = vmul.f32 %v200_v46, %v1216_v13 }
 0x117   :  { %277 = vmatpush1.bf16.msra.mxu0 %v238_v49 }
 0x118   :  { %v203_v50 = vpack.c.bf16 %v201_v47, %v201_v47  ;;  %v204_v51 = vpack.c.bf16 %v202_v48, %v202_v48  ;;  %v210_v52 = vpop.permute.xlu1 %209  ;;  %v208_v53 = vpop.permute.xlu0 %207  ;;  %v251_v48 = vld [vmem:[#allocation2 + $0x78] sm:$0xff] }
 0x119   :  { %v211_v55 = vsel %vm131_vm5, %v208_v53, %v210_v52  ;;  %v212_v56 = vsel %vm131_vm5, %v210_v52, %v208_v53  ;;  %v241_v57 = vld [vmem:[#allocation2 + $0x28] sm:$0xff]  ;;  %v240_v60 = vld [vmem:[#allocation2 + $0x20] sm:$0xff] }
 0x11a   :  { %205 = vst [vmem:[#allocation2 + $0x50] sm:$0x3] %v203_v50  ;;  %206 = vst [vmem:[#allocation2 + $0x58] sm:$0x3] %v204_v51  ;;  %v213_v63 = vmul.f32 %v212_v56, %v1193_v61  ;;  %v214_v0 = vmul.f32 %v211_v55, %v1196_v62  ;;  %278 = vmatprep.subr.bf16.mxu0 %v241_v57  ;;  %v250_v55 = vld [vmem:[#allocation2 + $0x70] sm:$0xff] }
 0x11b   :  { %279 = vmatpush1.bf16.msra.mxu0 %v240_v60 }
 0x11c   :  { %v215_v1 = vpack.c.bf16 %v213_v63, %v213_v63  ;;  %v216_v2 = vpack.c.bf16 %v214_v0, %v214_v0  ;;  %v226_v3 = vpop.permute.xlu1 %225  ;;  %v224_v4 = vpop.permute.xlu0 %223 }
 0x11d   :  { %v227_v5 = vsel %vm159_vm6, %v224_v4, %v226_v3  ;;  %v228_v6 = vsel %vm159_vm6, %v226_v3, %v224_v4  ;;  %v243_v7 = vld [vmem:[#allocation2 + $0x38] sm:$0xff]  ;;  %v242_v8 = vld [vmem:[#allocation2 + $0x30] sm:$0xff] }
 0x11e   :  { %217 = vst [vmem:[#allocation2 + $0x60] sm:$0x3] %v215_v1  ;;  %218 = vst [vmem:[#allocation2 + $0x68] sm:$0x3] %v216_v2  ;;  %v229_v10 = vmul.f32 %v227_v5, %v1213_v12  ;;  %v230_v11 = vmul.f32 %v228_v6, %v1216_v13  ;;  %280 = vmatprep.subr.bf16.mxu0 %v243_v7  ;;  %v648_v4 = vld [vmem:[#allocation2 + $0xb8] sm:$0xff]  ;;  %v647_v6 = vld [vmem:[#allocation2 + $0xb0] sm:$0xff] }
 0x11f   :  { %281 = vmatpush1.bf16.msra.mxu0 %v242_v8 }
 0x120   :  { %v231_v14 = vpack.c.bf16 %v229_v10, %v229_v10  ;;  %v232_v15 = vpack.c.bf16 %v230_v11, %v230_v11  ;;  %282 = vmatprep.subr.bf16.mxu0 %v245_v9  ;;  %v563_v17 = vpop.permute.xlu1 %562  ;;  %v561_v18 = vpop.permute.xlu0 %560  ;;  %v654_v10 = vld [vmem:[#allocation2 + $0xe8] sm:$0xff]  ;;  %v653_v11 = vld [vmem:[#allocation2 + $0xe0] sm:$0xff] }
 0x121   :  { %v247_v19 = vld [vmem:[#allocation2 + $0x58] sm:$0xff]  ;;  %v564_v20 = vsel %vm131_vm5, %v561_v18, %v563_v17  ;;  %v565_v21 = vsel %vm131_vm5, %v563_v17, %v561_v18  ;;  %v246_v24 = vld [vmem:[#allocation2 + $0x50] sm:$0xff] }
 0x122   :  { %233 = vst [vmem:[#allocation2 + $0x80] sm:$0x3] %v231_v14  ;;  %234 = vst [vmem:[#allocation2 + $0x88] sm:$0x3] %v232_v15  ;;  %v566_v22 = vmul.f32 %v565_v21, %v1193_v61  ;;  %v567_v23 = vmul.f32 %v564_v20, %v1196_v62 }
 0x123   :  { %283 = vmatpush1.bf16.msra.mxu0 %v244_v16 }
 0x124   :  { %284 = vmatprep.subr.bf16.mxu0 %v247_v19  ;;  %v568_v26 = vpack.c.bf16 %v566_v22, %v566_v22  ;;  %v569_v27 = vpack.c.bf16 %v567_v23, %v567_v23  ;;  %v579_v28 = vpop.permute.xlu1 %578  ;;  %v577_v29 = vpop.permute.xlu0 %576 }
 0x125   :  { %v580_v30 = vsel %vm159_vm6, %v577_v29, %v579_v28  ;;  %v581_v31 = vsel %vm159_vm6, %v579_v28, %v577_v29  ;;  %v249_v38 = vld [vmem:[#allocation2 + $0x68] sm:$0xff]  ;;  %v248_v45 = vld [vmem:[#allocation2 + $0x60] sm:$0xff] }
 0x126   :  { %570 = vst [vmem:[#allocation2 + $0xa0] sm:$0x3] %v568_v26  ;;  %571 = vst [vmem:[#allocation2 + $0xa8] sm:$0x3] %v569_v27  ;;  %v582_v36 = vmul.f32 %v580_v30, %v1213_v12  ;;  %v583_v37 = vmul.f32 %v581_v31, %v1216_v13 }
 0x127   :  { %285 = vmatpush1.bf16.msra.mxu0 %v246_v24 }
 0x128   :  { %286 = vmatprep.subr.bf16.mxu0 %v249_v38  ;;  %v584_v39 = vpack.c.bf16 %v582_v36, %v582_v36  ;;  %v585_v40 = vpack.c.bf16 %v583_v37, %v583_v37  ;;  %v591_v41 = vpop.permute.xlu1 %590  ;;  %v589_v42 = vpop.permute.xlu0 %588  ;;  %v660_v38 = vld [vmem:[#allocation2 + $0x118] sm:$0xff] }
 0x129   :  { %v592_v43 = vsel %vm131_vm5, %v589_v42, %v591_v41  ;;  %v593_v44 = vsel %vm131_vm5, %v591_v41, %v589_v42  ;;  %v253_v60 = vld [vmem:[#allocation2 + $0x88] sm:$0xff]  ;;  %v252_v2 = vld [vmem:[#allocation2 + $0x80] sm:$0xff] }
 0x12a   :  { %586 = vst [vmem:[#allocation2 + $0xc0] sm:$0x3] %v584_v39  ;;  %587 = vst [vmem:[#allocation2 + $0xc8] sm:$0x3] %v585_v40  ;;  %v594_v46 = vmul.f32 %v593_v44, %v1193_v61  ;;  %v595_v47 = vmul.f32 %v592_v43, %v1196_v62  ;;  %v659_v39 = vld [vmem:[#allocation2 + $0x110] sm:$0xff] }
 0x12b   :  { %287 = vmatpush1.bf16.msra.mxu0 %v248_v45 }
 0x12c   :  { %288 = vmatprep.subr.bf16.mxu0 %v251_v48  ;;  %v596_v49 = vpack.c.bf16 %v594_v46, %v594_v46  ;;  %v597_v50 = vpack.c.bf16 %v595_v47, %v595_v47  ;;  %v607_v51 = vpop.permute.xlu1 %606  ;;  %v605_v52 = vpop.permute.xlu0 %604 }
 0x12d   :  { %v608_v53 = vsel %vm159_vm6, %v605_v52, %v607_v51  ;;  %v609_v54 = vsel %vm159_vm6, %v607_v51, %v605_v52  ;;  %v646_v1 = vld [vmem:[#allocation2 + $0xa8] sm:$0xff]  ;;  %v645_v3 = vld [vmem:[#allocation2 + $0xa0] sm:$0xff] }
 0x12e   :  { %598 = vst [vmem:[#allocation2 + $0xd0] sm:$0x3] %v596_v49  ;;  %599 = vst [vmem:[#allocation2 + $0xd8] sm:$0x3] %v597_v50  ;;  %v610_v56 = vmul.f32 %v608_v53, %v1213_v12  ;;  %v611_v57 = vmul.f32 %v609_v54, %v1216_v13 }
 0x12f   :  { %289 = vmatpush1.bf16.msra.mxu0 %v250_v55 }
 0x130   :  { %290 = vmatprep.subr.bf16.mxu0 %v253_v60  ;;  %v612_v63 = vpack.c.bf16 %v610_v56, %v610_v56  ;;  %v613_v0 = vpack.c.bf16 %v611_v57, %v611_v57 }
 0x131   :  { %v650_v5 = vld [vmem:[#allocation2 + $0xc8] sm:$0xff]  ;;  %v649_v7 = vld [vmem:[#allocation2 + $0xc0] sm:$0xff] }
 0x132   :  { %614 = vst [vmem:[#allocation2 + $0xf0] sm:$0x3] %v612_v63  ;;  %615 = vst [vmem:[#allocation2 + $0xf8] sm:$0x3] %v613_v0 }
 0x133   :  { %291 = vmatpush1.bf16.msra.mxu0 %v252_v2 }
 0x134   :  { %682 = vmatprep.subr.bf16.mxu0 %v646_v1 }
 0x135   :  { %v652_v8 = vld [vmem:[#allocation2 + $0xd8] sm:$0xff]  ;;  %v651_v9 = vld [vmem:[#allocation2 + $0xd0] sm:$0xff] }
 0x136   :  { %307 = vmatmul.mubr.bf16.vlgmr.msra.gmra.mrb[0].mxu0 %v1172_v58 }
 0x137   :  { %683 = vmatpush1.bf16.msra.mxu0 %v645_v3  ;;  %938 = vmatprep.mubr.msk.bf16.mxu0 %vm270_vm4, %v1176_v59 }
 0x138   :  { %684 = vmatprep.subr.bf16.mxu0 %v648_v4 }
 0x139   :  { %v656_v14 = vld [vmem:[#allocation2 + $0xf8] sm:$0xff]  ;;  %v655_v15 = vld [vmem:[#allocation2 + $0xf0] sm:$0xff] }
 0x13b   :  { %685 = vmatpush1.bf16.msra.mxu0 %v647_v6 }
 0x13c   :  { %686 = vmatprep.subr.bf16.mxu0 %v650_v5 }
 0x13f   :  { %687 = vmatpush1.bf16.msra.mxu0 %v649_v7 }
 0x140   :  { %688 = vmatprep.subr.bf16.mxu0 %v652_v8 }
 0x143   :  { %689 = vmatpush1.bf16.msra.mxu0 %v651_v9 }
 0x144   :  { %690 = vmatprep.subr.bf16.mxu0 %v654_v10 }
 0x147   :  { %691 = vmatpush1.bf16.msra.mxu0 %v653_v11 }
 0x148   :  { %692 = vmatprep.subr.bf16.mxu0 %v656_v14 }
 0x14b   :  { %693 = vmatpush1.bf16.msra.mxu0 %v655_v15 }
 0x17e   :  { %v619_v59 = vpop.permute.xlu1 %618  ;;  %v617_v16 = vpop.permute.xlu0 %616 }
 0x17f   :  { %v620_v17 = vsel %vm131_vm5, %v617_v16, %v619_v59  ;;  %v621_v18 = vsel %vm131_vm5, %v619_v59, %v617_v16 }
 0x180   :  { %v622_v19 = vmul.f32 %v621_v18, %v1193_v61  ;;  %v623_v20 = vmul.f32 %v620_v17, %v1196_v62 }
 0x182   :  { %v624_v21 = vpack.c.bf16 %v622_v19, %v622_v19  ;;  %v625_v22 = vpack.c.bf16 %v623_v20, %v623_v20  ;;  %v635_v23 = vpop.permute.xlu1 %634  ;;  %v633_v24 = vpop.permute.xlu0 %632 }
 0x183   :  { %v636_v26 = vsel %vm159_vm6, %v633_v24, %v635_v23  ;;  %v637_v27 = vsel %vm159_vm6, %v635_v23, %v633_v24  ;;  %v1335_v24 = vld [vmem:[%s1467_s4] sm:$0xff] }
 0x184   :  { %626 = vst [vmem:[#allocation2 + $0x100] sm:$0x3] %v624_v21  ;;  %627 = vst [vmem:[#allocation2 + $0x108] sm:$0x3] %v625_v22  ;;  %v638_v28 = vmul.f32 %v636_v26, %v1213_v12  ;;  %v639_v29 = vmul.f32 %v637_v27, %v1216_v13  ;;  %v1339_v26 = vcombine.high %v1335_v24, %v1335_v24 }
 0x186   :  { %v640_v30 = vpack.c.bf16 %v638_v28, %v638_v28  ;;  %v641_v31 = vpack.c.bf16 %v639_v29, %v639_v29  ;;  %934 = vmatprep.mubr.msk.bf16.mxu1 %vm454_vm11, %v1339_v26 }
 0x188   :  { %642 = vst [vmem:[#allocation2 + $0x120] sm:$0x3] %v640_v30  ;;  %643 = vst [vmem:[#allocation2 + $0x128] sm:$0x3] %v641_v31 }
 0x18b   :  { %v658_v36 = vld [vmem:[#allocation2 + $0x108] sm:$0xff]  ;;  %v657_v37 = vld [vmem:[#allocation2 + $0x100] sm:$0xff] }
 0x18c   :  { %694 = vmatprep.subr.bf16.mxu0 %v658_v36 }
 0x18d   :  { %695 = vmatpush1.bf16.msra.mxu0 %v657_v37 }
 0x18e   :  { %696 = vmatprep.subr.bf16.mxu0 %v660_v38 }
 0x18f   :  { %v662_v40 = vld [vmem:[#allocation2 + $0x128] sm:$0xff]  ;;  %v661_v41 = vld [vmem:[#allocation2 + $0x120] sm:$0xff] }
 0x191   :  { %697 = vmatpush1.bf16.msra.mxu0 %v659_v39 }
 0x192   :  { %698 = vmatprep.subr.bf16.mxu0 %v662_v40 }
 0x193   :  { %v258_v42 = vpop.permute.xlu0 %257 }
 0x195   :  { %699 = vmatpush1.bf16.msra.mxu0 %v661_v41 }
 0x198   :  { %715 = vmatmul.mubr.bf16.vlgmr.msra.gmra.mrb[4].mxu0 %v1172_v58  ;;  %v667_v58 = vpop.permute.xlu1 %666 }
 0x209   :  { %v308_v43 = vpop.f32.mrb[0].mxu0 }
 0x20a   :  { %v309_v44 = vadd.f32 %v308_v43, %v258_v42  ;;  %v310_v45 = vpop.f32.mrb[1].mxu0 }
 0x20b   :  { %v311_v46 = vadd.f32 %v310_v45, %v258_v42  ;;  %v312_v47 = vpop.f32.mrb[2].mxu0 }
 0x20c   :  { %vm315_vm7 = vcmp.ge.f32.partialorder %v309_v44, 0.0  ;;  %v317_v48 = vmul.f32 0.2, %v309_v44  ;;  %v313_v49 = vpop.f32.mrb[3].mxu0 }
 0x20d   :  { %vm316_vm8 = vcmp.ge.f32.partialorder %v311_v46, 0.0  ;;  %v318_v50 = vmul.f32 0.2, %v311_v46 }
 0x20e   :  { %v319_v51 = vsel %vm315_vm7, %v309_v44, %v317_v48 }
 0x20f   :  { %v377_v52 = vpack.c.bf16 %v319_v51, %v319_v51  ;;  %v320_v53 = vsel %vm316_vm8, %v311_v46, %v318_v50  ;;  %321 = vrot.lane.b32.xlu1 %v319_v51, %s1005_s2 }
 0x210   :  { %v378_v54 = vpack.c.bf16 %v320_v53, %v320_v53  ;;  %323 = vrot.lane.b32.xlu0 %v320_v53, %s1005_s2 }
 0x211   :  { %379 = vst [vmem:[#allocation2 + $0x40] sm:$0x3] %v377_v52 }
 0x212   :  { %380 = vst [vmem:[#allocation2 + $0x48] sm:$0x3] %v378_v54 }
 0x213   :  { %329 = vrot.lane.b32.xlu1 %v319_v51, %s1006_s0 }
 0x214   :  { %331 = vrot.lane.b32.xlu0 %v320_v53, %s1006_s0 }
 0x26b   :  { %v716_v55 = vpop.f32.mrb[4].mxu0 }
 0x26c   :  { %v717_v56 = vadd.f32 %v716_v55, %v667_v58  ;;  %v718_v57 = vpop.f32.mrb[5].mxu0 }
 0x26d   :  { %v719_v60 = vadd.f32 %v718_v57, %v667_v58  ;;  %v720_v63 = vpop.f32.mrb[6].mxu0 }
 0x26e   :  { %vm723_vm9 = vcmp.ge.f32.partialorder %v717_v56, 0.0  ;;  %v725_v0 = vmul.f32 0.2, %v717_v56  ;;  %v721_v1 = vpop.f32.mrb[7].mxu0 }
 0x26f   :  { %vm724_vm10 = vcmp.ge.f32.partialorder %v719_v60, 0.0  ;;  %v726_v2 = vmul.f32 0.2, %v719_v60 }
 0x270   :  { %v727_v3 = vsel %vm723_vm9, %v717_v56, %v725_v0 }
 0x271   :  { %v785_v4 = vpack.c.bf16 %v727_v3, %v727_v3  ;;  %v728_v5 = vsel %vm724_vm10, %v719_v60, %v726_v2  ;;  %729 = vrot.lane.b32.xlu1 %v727_v3, %s1005_s2 }
 0x272   :  { %v786_v6 = vpack.c.bf16 %v728_v5, %v728_v5  ;;  %731 = vrot.lane.b32.xlu0 %v728_v5, %s1005_s2 }
 0x273   :  { %787 = vst [vmem:[#allocation2 + $0xe0] sm:$0x3] %v785_v4  ;;  %v850_v4 = vld [vmem:[%s1468_s5] sm:$0xff]  ;;  %s1010_s5 = smov [#allocation6]  }
 0x274   :  { %788 = vst [vmem:[#allocation2 + $0xe8] sm:$0x3] %v786_v6  ;;  %s914_s28 = sshll.u32 %s1010_s5, 4  ;;  %s915_s28 = int_to_ptr.vmem [resolvable:$true] %s914_s28 }
 0x275   :  { %s977_s29 = scalar_lea.vmem %s915_s28, 512  ;;  %p982_p9 = scmp.lt.s32.totalorder %s915_s28, %s915_s28 }
 0x276   :  { %p978_p8 = scmp.ne.s32.totalorder %s915_s28, %s977_s29  ;;  %p983_p10 = scmp.lt.s32.totalorder %s977_s29, %s977_s29 }
 0x278   :  { %p984_p11 = por %p983_p10, %p982_p9 }
 0x27a   :  { %p985_p12 = pnand %p984_p11, %p978_p8 }
 0x281   :  { %v322_v7 = vpop.permute.xlu1 %321 }
 0x282   :  { %v324_v8 = vpop.permute.xlu0 %323 }
 0x283   :  { %v325_v9 = vsel %vm91_vm2, %v322_v7, %v324_v8  ;;  %v326_v10 = vsel %vm91_vm2, %v324_v8, %v322_v7 }
 0x284   :  { %v327_v11 = vmul.f32 %v326_v10, %v1118_v32  ;;  %v328_v14 = vmul.f32 %v325_v9, %v1121_v33 }
 0x285   :  { %v330_v15 = vpop.permute.xlu1 %329 }
 0x286   :  { %v349_v59 = vpack.c.bf16 %v327_v11, %v327_v11  ;;  %v350_v16 = vpack.c.bf16 %v328_v14, %v328_v14  ;;  %v332_v17 = vpop.permute.xlu0 %331  ;;  %337 = vrot.lane.b32.xlu1 %v327_v11, %s1008_s17  ;;  %339 = vrot.lane.b32.xlu0 %v328_v14, %s1008_s17 }
 0x287   :  { %v333_v18 = vsel %vm111_vm3, %v330_v15, %v332_v17  ;;  %v334_v19 = vsel %vm111_vm3, %v332_v17, %v330_v15 }
 0x288   :  { %351 = vst [vmem:[#allocation2 + $0x10] sm:$0x3] %v349_v59  ;;  %352 = vst [vmem:[#allocation2 + $0x18] sm:$0x3] %v350_v16  ;;  %v335_v20 = vmul.f32 %v333_v18, %v1125_v34  ;;  %v336_v21 = vmul.f32 %v334_v19, %v1128_v35 }
 0x28a   :  { %v405_v22 = vpack.c.bf16 %v335_v20, %v335_v20  ;;  %v406_v23 = vpack.c.bf16 %v336_v21, %v336_v21  ;;  %737 = vrot.lane.b32.xlu1 %v727_v3, %s1006_s0  ;;  %739 = vrot.lane.b32.xlu0 %v728_v5, %s1006_s0 }
 0x28c   :  { %407 = vst [vmem:[#allocation2 + $0x70] sm:$0x3] %v405_v22  ;;  %408 = vst [vmem:[#allocation2 + $0x78] sm:$0x3] %v406_v23 }
 0x28e   :  { %353 = vrot.lane.b32.xlu1 %v327_v11, %s1009_s18  ;;  %355 = vrot.lane.b32.xlu0 %v328_v14, %s1009_s18 }
 0x28f   :  { %v425_v7 = vld [vmem:[#allocation2 + $0x18] sm:$0xff]  ;;  %v424_v17 = vld [vmem:[#allocation2 + $0x10] sm:$0xff] }
 0x292   :  { %365 = vrot.lane.b32.xlu1 %v319_v51, %s1008_s17  ;;  %367 = vrot.lane.b32.xlu0 %v320_v53, %s1008_s17 }
 0x296   :  { %381 = vrot.lane.b32.xlu1 %v319_v51, %s1009_s18  ;;  %383 = vrot.lane.b32.xlu0 %v320_v53, %s1009_s18 }
 0x29a   :  { %395 = vrot.lane.b32.xlu0 %v336_v21, %s1008_s17  ;;  %393 = vrot.lane.b32.xlu1 %v335_v20, %s1008_s17 }
 0x29e   :  { %411 = vrot.lane.b32.xlu0 %v336_v21, %s1009_s18  ;;  %409 = vrot.lane.b32.xlu1 %v335_v20, %s1009_s18 }
 0x2e3   :  { %v730_v27 = vpop.permute.xlu1 %729 }
 0x2e4   :  { %v732_v28 = vpop.permute.xlu0 %731 }
 0x2e5   :  { %v733_v29 = vsel %vm91_vm2, %v730_v27, %v732_v28  ;;  %v734_v30 = vsel %vm91_vm2, %v732_v28, %v730_v27 }
 0x2e6   :  { %v735_v31 = vmul.f32 %v734_v30, %v1118_v32  ;;  %v736_v36 = vmul.f32 %v733_v29, %v1121_v33 }
 0x2e8   :  { %v757_v37 = vpack.c.bf16 %v735_v31, %v735_v31  ;;  %v758_v38 = vpack.c.bf16 %v736_v36, %v736_v36  ;;  %745 = vrot.lane.b32.xlu1 %v735_v31, %s1008_s17  ;;  %747 = vrot.lane.b32.xlu0 %v736_v36, %s1008_s17 }
 0x2ea   :  { %759 = vst [vmem:[#allocation2 + $0xb0] sm:$0x3] %v757_v37  ;;  %760 = vst [vmem:[#allocation2 + $0xb8] sm:$0x3] %v758_v38 }
 0x2ec   :  { %761 = vrot.lane.b32.xlu1 %v735_v31, %s1009_s18  ;;  %763 = vrot.lane.b32.xlu0 %v736_v36, %s1009_s18 }
 0x2f0   :  { %773 = vrot.lane.b32.xlu1 %v727_v3, %s1008_s17  ;;  %775 = vrot.lane.b32.xlu0 %v728_v5, %s1008_s17 }
 0x2f4   :  { %789 = vrot.lane.b32.xlu1 %v727_v3, %s1009_s18  ;;  %791 = vrot.lane.b32.xlu0 %v728_v5, %s1009_s18 }
 0x2f8   :  { %v340_v32 = vpop.permute.xlu0 %339  ;;  %v338_v33 = vpop.permute.xlu1 %337 }
 0x2f9   :  { %v341_v39 = vsel %vm131_vm5, %v338_v33, %v340_v32  ;;  %v342_v40 = vsel %vm131_vm5, %v340_v32, %v338_v33 }
 0x2fa   :  { %v343_v41 = vmul.f32 %v342_v40, %v1193_v61  ;;  %v344_v42 = vmul.f32 %v341_v39, %v1196_v62 }
 0x2fc   :  { %v345_v43 = vpack.c.bf16 %v343_v41, %v343_v41  ;;  %v346_v44 = vpack.c.bf16 %v344_v42, %v344_v42  ;;  %v740_v45 = vpop.permute.xlu0 %739  ;;  %v738_v46 = vpop.permute.xlu1 %737 }
 0x2fd   :  { %v741_v47 = vsel %vm111_vm3, %v738_v46, %v740_v45  ;;  %v742_v48 = vsel %vm111_vm3, %v740_v45, %v738_v46  ;;  %v430_v46 = vld [vmem:[#allocation2 + $0x40] sm:$0xff] }
 0x2fe   :  { %347 = vst [vmem:[#allocation2] sm:$0x3] %v345_v43  ;;  %348 = vst [vmem:[#allocation2 + $0x8] sm:$0x3] %v346_v44  ;;  %v743_v49 = vmul.f32 %v741_v47, %v1125_v34  ;;  %v744_v50 = vmul.f32 %v742_v48, %v1128_v35  ;;  %v431_v43 = vld [vmem:[#allocation2 + $0x48] sm:$0xff] }
 0x300   :  { %v813_v51 = vpack.c.bf16 %v743_v49, %v743_v49  ;;  %v814_v52 = vpack.c.bf16 %v744_v50, %v744_v50  ;;  %v356_v53 = vpop.permute.xlu0 %355  ;;  %803 = vrot.lane.b32.xlu0 %v744_v50, %s1008_s17  ;;  %801 = vrot.lane.b32.xlu1 %v743_v49, %s1008_s17  ;;  %v354_v54 = vpop.permute.xlu1 %353 }
 0x301   :  { %v357_v58 = vsel %vm159_vm6, %v354_v54, %v356_v53  ;;  %v358_v55 = vsel %vm159_vm6, %v356_v53, %v354_v54  ;;  %v441_v54 = vld [vmem:[#allocation2 + $0x98] sm:$0xff] }
 0x302   :  { %815 = vst [vmem:[#allocation2 + $0x110] sm:$0x3] %v813_v51  ;;  %816 = vst [vmem:[#allocation2 + $0x118] sm:$0x3] %v814_v52  ;;  %v359_v34 = vmul.f32 %v357_v58, %v1213_v12  ;;  %v360_v35 = vmul.f32 %v358_v55, %v1216_v13  ;;  %v437_v51 = vld [vmem:[#allocation2 + $0x78] sm:$0xff]  ;;  %v436_v52 = vld [vmem:[#allocation2 + $0x70] sm:$0xff] }
 0x303   :  { %v440_v55 = vld [vmem:[#allocation2 + $0x90] sm:$0xff] }
 0x304   :  { %v361_v56 = vpack.c.bf16 %v359_v34, %v359_v34  ;;  %v362_v57 = vpack.c.bf16 %v360_v35, %v360_v35  ;;  %v368_v60 = vpop.permute.xlu0 %367  ;;  %819 = vrot.lane.b32.xlu0 %v744_v50, %s1009_s18  ;;  %817 = vrot.lane.b32.xlu1 %v743_v49, %s1009_s18  ;;  %v366_v63 = vpop.permute.xlu1 %365  ;;  %v1408_v34 = vcombine.low %v1335_v24, %v1335_v24 }
 0x305   :  { %v369_v0 = vsel %vm131_vm5, %v366_v63, %v368_v60  ;;  %v370_v1 = vsel %vm131_vm5, %v368_v60, %v366_v63  ;;  %v423_v2 = vld [vmem:[#allocation2 + $0x8] sm:$0xff]  ;;  %v422_v3 = vld [vmem:[#allocation2] sm:$0xff] }
 0x306   :  { %363 = vst [vmem:[#allocation2 + $0x20] sm:$0x3] %v361_v56  ;;  %364 = vst [vmem:[#allocation2 + $0x28] sm:$0x3] %v362_v57  ;;  %v371_v5 = vmul.f32 %v370_v1, %v1193_v61  ;;  %v372_v6 = vmul.f32 %v369_v0, %v1196_v62  ;;  %458 = vmatprep.subr.bf16.mxu1 %v423_v2 }
 0x307   :  { %459 = vmatpush1.bf16.msra.mxu1 %v422_v3 }
 0x308   :  { %v373_v8 = vpack.c.bf16 %v371_v5, %v371_v5  ;;  %v374_v9 = vpack.c.bf16 %v372_v6, %v372_v6  ;;  %v384_v10 = vpop.permute.xlu0 %383  ;;  %460 = vmatprep.subr.bf16.mxu1 %v425_v7  ;;  %853 = vperm.xlu0 %951, %v850_v4   ;;  %v382_v11 = vpop.permute.xlu1 %381 }
 0x309   :  { %445 = vperm.xlu1 %952, %v850_v4   ;;  %v385_v14 = vsel %vm159_vm6, %v382_v11, %v384_v10  ;;  %v386_v15 = vsel %vm159_vm6, %v384_v10, %v382_v11  ;;  %v845_v25 = vld [vmem:[#allocation2 + $0x118] sm:$0xff] }
 0x30a   :  { %375 = vst [vmem:[#allocation2 + $0x30] sm:$0x3] %v373_v8  ;;  %376 = vst [vmem:[#allocation2 + $0x38] sm:$0x3] %v374_v9  ;;  %v387_v59 = vmul.f32 %v385_v14, %v1213_v12  ;;  %v388_v16 = vmul.f32 %v386_v15, %v1216_v13 }
 0x30b   :  { %461 = vmatpush1.bf16.msra.mxu1 %v424_v17 }
 0x30c   :  { %v389_v18 = vpack.c.bf16 %v387_v59, %v387_v59  ;;  %v390_v19 = vpack.c.bf16 %v388_v16, %v388_v16  ;;  %v396_v20 = vpop.permute.xlu0 %395  ;;  %v394_v21 = vpop.permute.xlu1 %393 }
 0x30d   :  { %v397_v22 = vsel %vm131_vm5, %v394_v21, %v396_v20  ;;  %v398_v23 = vsel %vm131_vm5, %v396_v20, %v394_v21  ;;  %v427_v27 = vld [vmem:[#allocation2 + $0x28] sm:$0xff]  ;;  %v426_v28 = vld [vmem:[#allocation2 + $0x20] sm:$0xff] }
 0x30e   :  { %391 = vst [vmem:[#allocation2 + $0x50] sm:$0x3] %v389_v18  ;;  %392 = vst [vmem:[#allocation2 + $0x58] sm:$0x3] %v390_v19  ;;  %v399_v29 = vmul.f32 %v398_v23, %v1193_v61  ;;  %v400_v30 = vmul.f32 %v397_v22, %v1196_v62  ;;  %462 = vmatprep.subr.bf16.mxu1 %v427_v27 }
 0x30f   :  { %463 = vmatpush1.bf16.msra.mxu1 %v426_v28 }
 0x310   :  { %v401_v31 = vpack.c.bf16 %v399_v29, %v399_v29  ;;  %v402_v36 = vpack.c.bf16 %v400_v30, %v400_v30  ;;  %v412_v37 = vpop.permute.xlu0 %411  ;;  %v410_v38 = vpop.permute.xlu1 %409  ;;  %v833_v29 = vld [vmem:[#allocation2 + $0xb8] sm:$0xff] }
 0x311   :  { %v413_v32 = vsel %vm159_vm6, %v410_v38, %v412_v37  ;;  %v414_v33 = vsel %vm159_vm6, %v412_v37, %v410_v38  ;;  %v429_v39 = vld [vmem:[#allocation2 + $0x38] sm:$0xff]  ;;  %v428_v40 = vld [vmem:[#allocation2 + $0x30] sm:$0xff] }
 0x312   :  { %403 = vst [vmem:[#allocation2 + $0x60] sm:$0x3] %v401_v31  ;;  %404 = vst [vmem:[#allocation2 + $0x68] sm:$0x3] %v402_v36  ;;  %v415_v41 = vmul.f32 %v413_v32, %v1213_v12  ;;  %v416_v42 = vmul.f32 %v414_v33, %v1216_v13  ;;  %464 = vmatprep.subr.bf16.mxu1 %v429_v39  ;;  %v832_v36 = vld [vmem:[#allocation2 + $0xb0] sm:$0xff] }
 0x313   :  { %465 = vmatpush1.bf16.msra.mxu1 %v428_v40 }
 0x314   :  { %v417_v44 = vpack.c.bf16 %v415_v41, %v415_v41  ;;  %v418_v45 = vpack.c.bf16 %v416_v42, %v416_v42  ;;  %466 = vmatprep.subr.bf16.mxu1 %v431_v43 }
 0x315   :  { %v433_v47 = vld [vmem:[#allocation2 + $0x58] sm:$0xff]  ;;  %v432_v48 = vld [vmem:[#allocation2 + $0x50] sm:$0xff] }
 0x316   :  { %419 = vst [vmem:[#allocation2 + $0x80] sm:$0x3] %v417_v44  ;;  %420 = vst [vmem:[#allocation2 + $0x88] sm:$0x3] %v418_v45  ;;  %v839_v45 = vld [vmem:[#allocation2 + $0xe8] sm:$0xff] }
 0x317   :  { %467 = vmatpush1.bf16.msra.mxu1 %v430_v46 }
 0x318   :  { %468 = vmatprep.subr.bf16.mxu1 %v433_v47 }
 0x319   :  { %v435_v49 = vld [vmem:[#allocation2 + $0x68] sm:$0xff]  ;;  %v434_v50 = vld [vmem:[#allocation2 + $0x60] sm:$0xff] }
 0x31b   :  { %469 = vmatpush1.bf16.msra.mxu1 %v432_v48 }
 0x31c   :  { %470 = vmatprep.subr.bf16.mxu1 %v435_v49 }
 0x31d   :  { %v439_v53 = vld [vmem:[#allocation2 + $0x88] sm:$0xff]  ;;  %v438_v58 = vld [vmem:[#allocation2 + $0x80] sm:$0xff] }
 0x31f   :  { %471 = vmatpush1.bf16.msra.mxu1 %v434_v50 }
 0x320   :  { %472 = vmatprep.subr.bf16.mxu1 %v437_v51 }
 0x323   :  { %473 = vmatpush1.bf16.msra.mxu1 %v436_v52  ;;  %v838_v52 = vld [vmem:[#allocation2 + $0xe0] sm:$0xff] }
 0x324   :  { %474 = vmatprep.subr.bf16.mxu1 %v439_v53 }
 0x327   :  { %475 = vmatpush1.bf16.msra.mxu1 %v438_v58 }
 0x328   :  { %476 = vmatprep.subr.bf16.mxu1 %v441_v54 }
 0x32b   :  { %477 = vmatpush1.bf16.msra.mxu1 %v440_v55 }
 0x32e   :  { %491 = vmatmul.mubr.bf16.vlgmr.msra.gmra.mrb[0].mxu1 %v1408_v34 }
 0x32f   :  { %941 = vmatprep.mubr.msk.bf16.mxu1 %vm454_vm11, %v1339_v26 }
 0x35a   :  { %v748_v35 = vpop.permute.xlu0 %747  ;;  %v746_v56 = vpop.permute.xlu1 %745 }
 0x35b   :  { %v749_v57 = vsel %vm131_vm5, %v746_v56, %v748_v35  ;;  %v750_v60 = vsel %vm131_vm5, %v748_v35, %v746_v56 }
 0x35c   :  { %v751_v63 = vmul.f32 %v750_v60, %v1193_v61  ;;  %v752_v0 = vmul.f32 %v749_v57, %v1196_v62  ;;  %v844_v57 = vld [vmem:[#allocation2 + $0x110] sm:$0xff] }
 0x35e   :  { %v753_v24 = vpack.c.bf16 %v751_v63, %v751_v63  ;;  %v754_v1 = vpack.c.bf16 %v752_v0, %v752_v0  ;;  %v764_v2 = vpop.permute.xlu0 %763  ;;  %v762_v3 = vpop.permute.xlu1 %761  ;;  %v848_v63 = vld [vmem:[#allocation2 + $0x130] sm:$0xff] }
 0x35f   :  { %v765_v4 = vsel %vm159_vm6, %v762_v3, %v764_v2  ;;  %v766_v26 = vsel %vm159_vm6, %v764_v2, %v762_v3 }
 0x360   :  { %755 = vst [vmem:[#allocation2 + $0xa0] sm:$0x3] %v753_v24  ;;  %756 = vst [vmem:[#allocation2 + $0xa8] sm:$0x3] %v754_v1  ;;  %v767_v5 = vmul.f32 %v765_v4, %v1213_v12  ;;  %v768_v6 = vmul.f32 %v766_v26, %v1216_v13 }
 0x362   :  { %v769_v7 = vpack.c.bf16 %v767_v5, %v767_v5  ;;  %v770_v8 = vpack.c.bf16 %v768_v6, %v768_v6  ;;  %v776_v9 = vpop.permute.xlu0 %775  ;;  %v774_v10 = vpop.permute.xlu1 %773 }
 0x363   :  { %v777_v11 = vsel %vm131_vm5, %v774_v10, %v776_v9  ;;  %v778_v14 = vsel %vm131_vm5, %v776_v9, %v774_v10 }
 0x364   :  { %771 = vst [vmem:[#allocation2 + $0xc0] sm:$0x3] %v769_v7  ;;  %772 = vst [vmem:[#allocation2 + $0xc8] sm:$0x3] %v770_v8  ;;  %v779_v15 = vmul.f32 %v778_v14, %v1193_v61  ;;  %v780_v59 = vmul.f32 %v777_v11, %v1196_v62 }
 0x366   :  { %v781_v16 = vpack.c.bf16 %v779_v15, %v779_v15  ;;  %v782_v17 = vpack.c.bf16 %v780_v59, %v780_v59  ;;  %v792_v18 = vpop.permute.xlu0 %791  ;;  %v790_v19 = vpop.permute.xlu1 %789 }
 0x367   :  { %v793_v20 = vsel %vm159_vm6, %v790_v19, %v792_v18  ;;  %v794_v21 = vsel %vm159_vm6, %v792_v18, %v790_v19  ;;  %v831_v22 = vld [vmem:[#allocation2 + $0xa8] sm:$0xff]  ;;  %v830_v23 = vld [vmem:[#allocation2 + $0xa0] sm:$0xff] }
 0x368   :  { %783 = vst [vmem:[#allocation2 + $0xd0] sm:$0x3] %v781_v16  ;;  %784 = vst [vmem:[#allocation2 + $0xd8] sm:$0x3] %v782_v17  ;;  %v795_v27 = vmul.f32 %v793_v20, %v1213_v12  ;;  %v796_v28 = vmul.f32 %v794_v21, %v1216_v13  ;;  %865 = vmatprep.subr.bf16.mxu1 %v831_v22 }
 0x369   :  { %866 = vmatpush1.bf16.msra.mxu1 %v830_v23 }
 0x36a   :  { %v797_v30 = vpack.c.bf16 %v795_v27, %v795_v27  ;;  %v798_v31 = vpack.c.bf16 %v796_v28, %v796_v28  ;;  %867 = vmatprep.subr.bf16.mxu1 %v833_v29 }
 0x36b   :  { %v835_v37 = vld [vmem:[#allocation2 + $0xc8] sm:$0xff]  ;;  %v834_v38 = vld [vmem:[#allocation2 + $0xc0] sm:$0xff] }
 0x36c   :  { %799 = vst [vmem:[#allocation2 + $0xf0] sm:$0x3] %v797_v30  ;;  %800 = vst [vmem:[#allocation2 + $0xf8] sm:$0x3] %v798_v31 }
 0x36d   :  { %868 = vmatpush1.bf16.msra.mxu1 %v832_v36 }
 0x36e   :  { %869 = vmatprep.subr.bf16.mxu1 %v835_v37 }
 0x36f   :  { %v837_v32 = vld [vmem:[#allocation2 + $0xd8] sm:$0xff]  ;;  %v836_v44 = vld [vmem:[#allocation2 + $0xd0] sm:$0xff] }
 0x371   :  { %870 = vmatpush1.bf16.msra.mxu1 %v834_v38 }
 0x372   :  { %v804_v33 = vpop.permute.xlu0 %803  ;;  %v802_v39 = vpop.permute.xlu1 %801  ;;  %871 = vmatprep.subr.bf16.mxu1 %v837_v32 }
 0x373   :  { %v805_v40 = vsel %vm131_vm5, %v802_v39, %v804_v33  ;;  %v806_v41 = vsel %vm131_vm5, %v804_v33, %v802_v39  ;;  %v841_v53 = vld [vmem:[#allocation2 + $0xf8] sm:$0xff]  ;;  %v840_v55 = vld [vmem:[#allocation2 + $0xf0] sm:$0xff] }
 0x374   :  { %v807_v42 = vmul.f32 %v806_v41, %v1193_v61  ;;  %v808_v43 = vmul.f32 %v805_v40, %v1196_v62 }
 0x375   :  { %872 = vmatpush1.bf16.msra.mxu1 %v836_v44 }
 0x376   :  { %v809_v46 = vpack.c.bf16 %v807_v42, %v807_v42  ;;  %v810_v47 = vpack.c.bf16 %v808_v43, %v808_v43  ;;  %v820_v48 = vpop.permute.xlu0 %819  ;;  %v818_v49 = vpop.permute.xlu1 %817  ;;  %873 = vmatprep.subr.bf16.mxu1 %v839_v45 }
 0x377   :  { %v821_v50 = vsel %vm159_vm6, %v818_v49, %v820_v48  ;;  %v822_v51 = vsel %vm159_vm6, %v820_v48, %v818_v49 }
 0x378   :  { %811 = vst [vmem:[#allocation2 + $0x100] sm:$0x3] %v809_v46  ;;  %812 = vst [vmem:[#allocation2 + $0x108] sm:$0x3] %v810_v47  ;;  %v823_v61 = vmul.f32 %v821_v50, %v1213_v12  ;;  %v824_v62 = vmul.f32 %v822_v51, %v1216_v13  ;;  %v849_v13 = vld [vmem:[#allocation2 + $0x138] sm:$0xff] }
 0x379   :  { %874 = vmatpush1.bf16.msra.mxu1 %v838_v52 }
 0x37a   :  { %v825_v54 = vpack.c.bf16 %v823_v61, %v823_v61  ;;  %v826_v58 = vpack.c.bf16 %v824_v62, %v824_v62  ;;  %875 = vmatprep.subr.bf16.mxu1 %v841_v53 }
 0x37c   :  { %827 = vst [vmem:[#allocation2 + $0x120] sm:$0x3] %v825_v54  ;;  %828 = vst [vmem:[#allocation2 + $0x128] sm:$0x3] %v826_v58 }
 0x37d   :  { %876 = vmatpush1.bf16.msra.mxu1 %v840_v55 }
 0x37f   :  { %v843_v35 = vld [vmem:[#allocation2 + $0x108] sm:$0xff]  ;;  %v842_v56 = vld [vmem:[#allocation2 + $0x100] sm:$0xff] }
 0x380   :  { %877 = vmatprep.subr.bf16.mxu1 %v843_v35 }
 0x381   :  { %878 = vmatpush1.bf16.msra.mxu1 %v842_v56 }
 0x382   :  { %879 = vmatprep.subr.bf16.mxu1 %v845_v25 }
 0x383   :  { %v847_v12 = vld [vmem:[#allocation2 + $0x128] sm:$0xff]  ;;  %v846_v60 = vld [vmem:[#allocation2 + $0x120] sm:$0xff] }
 0x385   :  { %880 = vmatpush1.bf16.msra.mxu1 %v844_v57 }
 0x386   :  { %881 = vmatprep.subr.bf16.mxu1 %v847_v12 }
 0x387   :  { %v854_v5 = vpop.permute.xlu0 %853 }
 0x388   :  { %v446_v0 = vpop.permute.xlu1 %445 }
 0x389   :  { %882 = vmatpush1.bf16.msra.mxu1 %v846_v60 }
 0x38a   :  { %883 = vmatprep.subr.bf16.mxu1 %v849_v13 }
 0x38d   :  { %884 = vmatpush1.bf16.msra.mxu1 %v848_v63 }
 0x390   :  { %898 = vmatmul.mubr.bf16.vlgmr.msra.gmra.mrb[4].mxu1 %v1408_v34 }
 0x401   :  { %v492_v24 = vpop.f32.mrb[0].mxu1 }
 0x402   :  { %v493_v1 = vadd.f32 %v492_v24, %v446_v0  ;;  %v494_v2 = vpop.f32.mrb[1].mxu1 }
 0x403   :  { %v495_v3 = vadd.f32 %v494_v2, %v446_v0  ;;  %v496_v4 = vpop.f32.mrb[2].mxu1 }
 0x404   :  { %499 = vst [vmem:[#allocation6] sm:$0xff] %v493_v1  ;;  %v497_v26 = vpop.f32.mrb[3].mxu1 }
 0x405   :  { %500 = vst [vmem:[#allocation6 + $0x8] sm:$0xff] %v495_v3 }
 0x463   :  { %v899_v6 = vpop.f32.mrb[4].mxu1 }
 0x464   :  { %v900_v7 = vadd.f32 %v899_v6, %v854_v5  ;;  %v901_v8 = vpop.f32.mrb[5].mxu1 }
 0x465   :  { %v902_v9 = vadd.f32 %v901_v8, %v854_v5  ;;  %v903_v10 = vpop.f32.mrb[6].mxu1 }
 0x466   :  { %907 = vst [vmem:[#allocation6 + $0x10] sm:$0xff] %v900_v7  ;;  %v904_v34 = vpop.f32.mrb[7].mxu1 }
 0x467   :  { %908 = vst [vmem:[#allocation6 + $0x18] sm:$0xff] %v902_v9 }
 0x468   :  { %988 = shalt.err (!%p985_p12)
}
 0x469   :  { %s989_s8 = scalar_lea.hbm %s1469_s6, 512 }
 0x46a   :  { %p990_p13 = scmp.ne.s32.totalorder %s1469_s6, %s989_s8  ;;  %p993_p0 = scmp.lt.u32.totalorder %s989_s8, %s1469_s6 }
 0x46c   :  { %p995_p1 = pnand %p993_p0, %p990_p13 }
 0x46e   :  { %998 = shalt.err (!%p995_p1)
}
 0x46f   :  { %s1011_s0 = smov 256  }
 0x470   :  { %920 = dma.vmem_to_hbm [thread:$0]  %s915_s28, 512, %s1469_s6, [#allocation5], %s1011_s0, %s1011_s0, %s1005_s2  }
 0x471   :  { %1001 = dma.done.wait [#allocation5], 512  }
 0x472   :  { %1002 = vsyncadd [#allocation5], 4294966784 }
 0x473   :  { %924 = vsyncpa [#allocation4], 1 }
 0x474   :  { %925 = vsyncpa [#allocation5], 1 }

</bundles_post_ra>
